<compile_context>
chip_gen: v5e
topology: v5e:2x2
jax: 0.10.0
libtpu: 0.0.40
codegen_flags: <defaults>
</compile_context>

<pallas_src>
import functools

import jax
import jax.numpy as jnp
from jax.experimental import pallas as pl
from jax.experimental.pallas import tpu as pltpu


# ------------------------------ fused kernel --------------------------------


def _bottleneck_kernel(x_ref, cmask_ref, w1_ref, b1_ref, w2_ref, b2_ref,
                       w3_ref, b3_ref, wsc_ref, bsc_ref, o_ref, *, H, W):
    """Full BottleNeck block for a small batch of images, entirely in VMEM.

    x_ref    : (B, H*W, Cin)  bf16  NHWC rows, flattened spatially
    cmask_ref: (2, H*W, 1)    f32   [0]: 0 at col W-1, [1]: 0 at col 0
    w1_ref   : (Cin, Cm)      bf16  conv1, BN1 scale folded in
    w2_ref   : (9*Cm, Cm)     bf16  conv2 taps stacked along K, BN2 folded in
    w3_ref   : (Cm, C4p)      bf16  conv3, BN3 folded in
    wsc_ref  : (Cin, C4p)     bf16  shortcut conv, BNsc folded in
    b*_ref   : (1, C)         f32   folded BN biases
    o_ref    : (B, H*W, C4p)  bf16
    """
    B, HW, _ = x_ref.shape
    Cm = w1_ref.shape[1]
    R = B * HW

    x = x_ref[...].reshape(R, -1)                        # (R, Cin) bf16

    # ---- conv1 (1x1) + folded-BN bias + ReLU (f32 epilogue) ----------------
    h = jnp.dot(x, w1_ref[...], preferred_element_type=jnp.float32)
    h = jnp.maximum(h + b1_ref[...], 0.0)                # (R, Cm) f32
    h3 = h.reshape(B, HW, Cm)

    # Sources for the three horizontal tap positions.  A dw=0 tap (reads
    # column c-1) can only hit an invalid element whose *source* column is
    # W-1, and a dw=2 tap one whose source column is 0, so conv2's zero
    # padding in the W direction is implemented by pre-masking those two
    # columns (two f32 VPU multiplies) before the bf16 cast.  Zero padding in
    # the H direction is handled by the zero fill of the shifts below.
    src = (
        (h3 * cmask_ref[0]).astype(jnp.bfloat16),        # dw = 0 taps
        h3.astype(jnp.bfloat16),                         # dw = 1 taps
        (h3 * cmask_ref[1]).astype(jnp.bfloat16),        # dw = 2 taps
    )

    def shift(a, off):
        # result[b, q] = a[b, q + off], zero outside [0, HW) per image.
        if off == 0:
            return a
        z = jnp.zeros((B, abs(off), Cm), a.dtype)
        if off > 0:
            return jnp.concatenate([a[:, off:, :], z], axis=1)
        return jnp.concatenate([z, a[:, :off, :]], axis=1)

    # ---- conv2 (3x3, pad=1) as a single (R, 9*Cm) x (9*Cm, Cm) matmul ------
    taps = [shift(src[dw], (dh - 1) * W + (dw - 1))
            for dh in range(3) for dw in range(3)]
    cols = jnp.concatenate(taps, axis=-1).reshape(R, 9 * Cm)        # bf16
    h2 = jnp.dot(cols, w2_ref[...], preferred_element_type=jnp.float32)
    h2 = jnp.maximum(h2 + b2_ref[...], 0.0).astype(jnp.bfloat16)    # (R, Cm)

    # ---- conv3 (1x1) + shortcut (1x1) + residual add + final ReLU ----------
    r = jnp.dot(h2, w3_ref[...], preferred_element_type=jnp.float32) + b3_ref[...]
    s = jnp.dot(x, wsc_ref[...], preferred_element_type=jnp.float32) + bsc_ref[...]
    out = jnp.maximum(r + s, 0.0)                        # f32 epilogue
    o_ref[...] = out.astype(o_ref.dtype).reshape(B, HW, -1)


# ------------------------------- wrappers ------------------------------------


def _pick_images_per_step(n, hw, target_rows=512):
    """Largest divisor of n such that images_per_step * hw <= ~target_rows."""
    b = max(1, min(n, target_rows // max(hw, 1)))
    while n % b:
        b -= 1
    return b


def _column_masks(H, W):
    col = jnp.tile(jnp.arange(W, dtype=jnp.int32), H)          # flat column idx
    keep_dw0 = (col != W - 1).astype(jnp.float32)
    keep_dw2 = (col != 0).astype(jnp.float32)
    return jnp.stack([keep_dw0, keep_dw2], axis=0).reshape(2, H * W, 1)


def _vmem_bytes_estimate(B, HW, Cin, Cm, C4p):
    """Rough per-grid-step VMEM footprint (double-buffered blocks + temps)."""
    io = 2 * B * HW * (Cin + C4p) * 2                                 # x + out
    wts = 2 * ((Cin * Cm + 9 * Cm * Cm + Cm * C4p + Cin * C4p) * 2
               + (2 * Cm + 2 * C4p) * 4 + 2 * HW * 4)                 # weights/biases/masks
    tmp = B * HW * (9 * Cm * 2 * 2 + Cm * 4 * 2 + C4p * 4)            # cols/taps/h/h2/out
    return io + wts + tmp


def bottleneck_fused(x2d, p, *, N, H, W):
    """x2d: (N, H*W, Cin) bf16 -> (N, H*W, C4p) bf16 (stride-1 block output)."""
    HW = H * W
    Cin = x2d.shape[-1]
    Cm = p["w1"].shape[1]
    C4p = p["w3"].shape[1]
    B = _pick_images_per_step(N, HW)
    G = N // B
    cmask = _column_masks(H, W)

    vmem_limit = 48 * 1024 * 1024
    assert _vmem_bytes_estimate(B, HW, Cin, Cm, C4p) < vmem_limit, (
        "per-step VMEM footprint too large; add spatial row tiling (see TODO)")

    kern = functools.partial(_bottleneck_kernel, H=H, W=W)
    return pl.pallas_call(
        kern,
        out_shape=jax.ShapeDtypeStruct((N, HW, C4p), jnp.bfloat16),
        grid=(G,),
        in_specs=[
            pl.BlockSpec((B, HW, Cin), lambda g: (g, 0, 0)),
            pl.BlockSpec((2, HW, 1), lambda g: (0, 0, 0)),
            pl.BlockSpec((Cin, Cm), lambda g: (0, 0)),
            pl.BlockSpec((1, Cm), lambda g: (0, 0)),
            pl.BlockSpec((9 * Cm, Cm), lambda g: (0, 0)),
            pl.BlockSpec((1, Cm), lambda g: (0, 0)),
            pl.BlockSpec((Cm, C4p), lambda g: (0, 0)),
            pl.BlockSpec((1, C4p), lambda g: (0, 0)),
            pl.BlockSpec((Cin, C4p), lambda g: (0, 0)),
            pl.BlockSpec((1, C4p), lambda g: (0, 0)),
        ],
        out_specs=pl.BlockSpec((B, HW, C4p), lambda g: (g, 0, 0)),
        compiler_params=pltpu.CompilerParams(
            dimension_semantics=("parallel",),
            vmem_limit_bytes=vmem_limit),
    )(x2d, cmask, p["w1"], p["b1"], p["w2"], p["b2"],
      p["w3"], p["b3"], p["wsc"], p["bsc"])


def bottleneck_forward(x_nchw, p, stride=(1, 1)):
    """NCHW float32 in -> NCHW float32 out, matching BottleNeck.forward (eval BN)."""
    N, Cin, H, W = x_nchw.shape
    C4 = p["c4"]
    x = jnp.transpose(x_nchw, (0, 2, 3, 1)).astype(jnp.bfloat16)      # NHWC bf16
    out2d = bottleneck_fused(x.reshape(N, H * W, Cin), p, N=N, H=H, W=W)
    out = out2d[..., :C4].reshape(N, H, W, C4)
    sh, sw = stride
    if (sh, sw) != (1, 1):
        # The 1x1 convs and the pad-1 3x3 conv commute with spatial
        # subsampling, so striding the stride-1 block output is exact.
        # TODO(synk): apply the stride inside the kernel (strided pl.ds tap
        #             reads) to avoid the ~sh*sw redundant conv3/shortcut rows.
        out = out[:, ::sh, ::sw, :]
    return jnp.transpose(out, (0, 3, 1, 2)).astype(jnp.float32)       # NCHW


# --------------------------- parameter handling ------------------------------


def fold_bn(gamma, beta, mean, var, eps=1e-5):
    scale = gamma / jnp.sqrt(var + eps)
    return scale, beta - mean * scale


def make_params(key, in_channels, out_channels):
    C4 = out_channels * 4
    # Only lane-pad the output channels when C4 >= 128 (avoid inflating HBM
    # writeback for small blocks).
    C4p = C4 if C4 < 128 else ((C4 + 127) // 128) * 128
    ks = jax.random.split(key, 8)

    def bn_params(k, c):
        k1, k2, k3, k4 = jax.random.split(k, 4)
        return (jax.random.uniform(k1, (c,), jnp.float32, 0.8, 1.2),   # gamma
                0.1 * jax.random.normal(k2, (c,), jnp.float32),        # beta
                0.1 * jax.random.normal(k3, (c,), jnp.float32),        # running mean
                jax.random.uniform(k4, (c,), jnp.float32, 0.8, 1.2))   # running var

    raw = {
        # PyTorch conv weight layout: (Cout, Cin, kh, kw)
        "conv1_w": 0.1 * jax.random.normal(ks[0], (out_channels, in_channels, 1, 1), jnp.float32),
        "conv2_w": 0.1 * jax.random.normal(ks[1], (out_channels, out_channels, 3, 3), jnp.float32),
        "conv3_w": 0.1 * jax.random.normal(ks[2], (C4, out_channels, 1, 1), jnp.float32),
        "convsc_w": 0.1 * jax.random.normal(ks[3], (C4, in_channels, 1, 1), jnp.float32),
        "bn1": bn_params(ks[4], out_channels),
        "bn2": bn_params(ks[5], out_channels),
        "bn3": bn_params(ks[6], C4),
        "bnsc": bn_params(ks[7], C4),
    }

    s1, b1 = fold_bn(*raw["bn1"])
    s2, b2 = fold_bn(*raw["bn2"])
    s3, b3 = fold_bn(*raw["bn3"])
    ssc, bsc = fold_bn(*raw["bnsc"])

    def pad_c(a):
        return jnp.pad(a, [(0, 0)] * (a.ndim - 1) + [(0, C4p - a.shape[-1])])

    Cm = out_channels
    # BN scale folded into the conv weights; only bias remains in the kernel.
    w1 = raw["conv1_w"][:, :, 0, 0].T * s1[None, :]                        # (Cin, Cm)
    w2 = (jnp.transpose(raw["conv2_w"], (2, 3, 1, 0)).reshape(9, Cm, Cm)
          * s2[None, None, :]).reshape(9 * Cm, Cm)                         # (9*Cm, Cm)
    w3 = pad_c(raw["conv3_w"][:, :, 0, 0].T * s3[None, :])                 # (Cm, C4p)
    wsc = pad_c(raw["convsc_w"][:, :, 0, 0].T * ssc[None, :])              # (Cin, C4p)

    p = {
        "w1": w1.astype(jnp.bfloat16), "b1": b1[None, :],
        "w2": w2.astype(jnp.bfloat16), "b2": b2[None, :],
        "w3": w3.astype(jnp.bfloat16), "b3": pad_c(b3[None, :]),
        "wsc": wsc.astype(jnp.bfloat16), "bsc": pad_c(bsc[None, :]),
        "c4": C4,
    }
    return raw, p


# ------------------------ pure-JAX reference (check) -------------------------


def ref_forward(x_nchw, raw, stride):
    def conv(x, w, strd=(1, 1), padding="VALID"):
        return jax.lax.conv_general_dilated(
            x, w, strd, padding, dimension_numbers=("NCHW", "OIHW", "NCHW"))

    def bn(x, prm, eps=1e-5):
        g, b, m, v = prm
        return ((x - m[None, :, None, None])
                / jnp.sqrt(v[None, :, None, None] + eps)
                * g[None, :, None, None] + b[None, :, None, None])

    h = jax.nn.relu(bn(conv(x_nchw, raw["conv1_w"]), raw["bn1"]))
    h = jax.nn.relu(bn(conv(h, raw["conv2_w"], stride, ((1, 1), (1, 1))), raw["bn2"]))
    r = bn(conv(h, raw["conv3_w"]), raw["bn3"])
    s = bn(conv(x_nchw, raw["convsc_w"], stride), raw["bnsc"])
    return jax.nn.relu(r + s)


# ----------------------------------- main ------------------------------------


if __name__ == "__main__":
    in_channels, out_channels = 16, 8           # expansion 4 -> 32 output channels
    N, H, W = 2, 8, 8

    key = jax.random.PRNGKey(0)
    kx, kp = jax.random.split(key)
    x = jax.random.normal(kx, (N, in_channels, H, W), jnp.float32)    # NCHW input
    raw, params = make_params(kp, in_channels, out_channels)

    for stride in ((1, 1), (2, 2)):
        out = jax.block_until_ready(bottleneck_forward(x, params, stride))
        ref = jax.block_until_ready(ref_forward(x, raw, stride))
        assert out.shape == ref.shape, (out.shape, ref.shape)
        err = float(jnp.max(jnp.abs(out - ref)))
        # bf16 MXU inputs / bf16-stored intermediates vs. an all-f32 reference.
        assert jnp.allclose(out, ref, rtol=5e-2, atol=5e-2), (stride, err)

    print("KERNEL_OK")
</pallas_src>

<mosaic_0001>
module attributes {stable_mosaic.version = 11 : i64} {
  func.func @_bottleneck_kernel(%arg0: i32, %arg1: memref<2x64x16xbf16, #tpu.memory_space<vmem>>, %arg2: memref<2x64x1xf32, #tpu.memory_space<vmem>>, %arg3: memref<16x8xbf16, #tpu.memory_space<vmem>>, %arg4: memref<1x8xf32, #tpu.memory_space<vmem>>, %arg5: memref<72x8xbf16, #tpu.memory_space<vmem>>, %arg6: memref<1x8xf32, #tpu.memory_space<vmem>>, %arg7: memref<8x32xbf16, #tpu.memory_space<vmem>>, %arg8: memref<1x32xf32, #tpu.memory_space<vmem>>, %arg9: memref<16x32xbf16, #tpu.memory_space<vmem>>, %arg10: memref<1x32xf32, #tpu.memory_space<vmem>>, %arg11: memref<2x64x32xbf16, #tpu.memory_space<vmem>>) attributes {dimension_semantics = [#tpu.dimension_semantics<parallel>], iteration_bounds = array<i64: 1>, scalar_prefetch = 0 : i64, scratch_operands = 0 : i64, tpu.core_type = #tpu.core_type<tc>, window_params = [{transform_indices = @transform_0, window_bounds = array<i64: 2, 64, 16>}, {pipeline_mode = #tpu.pipeline_mode<synchronous>, transform_indices = @transform_1, window_bounds = array<i64: 2, 64, 1>}, {pipeline_mode = #tpu.pipeline_mode<synchronous>, transform_indices = @transform_2, window_bounds = array<i64: 16, 8>}, {pipeline_mode = #tpu.pipeline_mode<synchronous>, transform_indices = @transform_3, window_bounds = array<i64: 1, 8>}, {pipeline_mode = #tpu.pipeline_mode<synchronous>, transform_indices = @transform_4, window_bounds = array<i64: 72, 8>}, {pipeline_mode = #tpu.pipeline_mode<synchronous>, transform_indices = @transform_5, window_bounds = array<i64: 1, 8>}, {pipeline_mode = #tpu.pipeline_mode<synchronous>, transform_indices = @transform_6, window_bounds = array<i64: 8, 32>}, {pipeline_mode = #tpu.pipeline_mode<synchronous>, transform_indices = @transform_7, window_bounds = array<i64: 1, 32>}, {pipeline_mode = #tpu.pipeline_mode<synchronous>, transform_indices = @transform_8, window_bounds = array<i64: 16, 32>}, {pipeline_mode = #tpu.pipeline_mode<synchronous>, transform_indices = @transform_9, window_bounds = array<i64: 1, 32>}, {transform_indices = @transform_10, window_bounds = array<i64: 2, 64, 32>}]} {
    %c0 = arith.constant 0 : index
    %c0_0 = arith.constant 0 : index
    %c0_1 = arith.constant 0 : index
    %0 = vector.load %arg1[%c0, %c0_0, %c0_1] : memref<2x64x16xbf16, #tpu.memory_space<vmem>>, vector<2x64x16xbf16>
    %1 = vector.shape_cast %0 : vector<2x64x16xbf16> to vector<128x16xbf16>
    %c0_2 = arith.constant 0 : index
    %c0_3 = arith.constant 0 : index
    %2 = vector.load %arg3[%c0_2, %c0_3] : memref<16x8xbf16, #tpu.memory_space<vmem>>, vector<16x8xbf16>
    %cst = arith.constant dense<0.000000e+00> : vector<128x8xf32>
    %3 = tpu.matmul %1, %2, %cst {dimension_numbers = #tpu.dot_dimension_numbers<[1], [0], [0], [1], [0, 0, 1, 1], [], []>} : vector<128x16xbf16>, vector<16x8xbf16>, vector<128x8xf32> -> vector<128x8xf32>
    %c0_4 = arith.constant 0 : index
    %c0_5 = arith.constant 0 : index
    %4 = vector.load %arg4[%c0_4, %c0_5] : memref<1x8xf32, #tpu.memory_space<vmem>>, vector<1x8xf32>
    %5 = vector.broadcast %4 : vector<1x8xf32> to vector<128x8xf32>
    %6 = arith.addf %3, %5 : vector<128x8xf32>
    %cst_6 = arith.constant 0.000000e+00 : f32
    %7 = vector.broadcast %cst_6 : f32 to vector<128x8xf32>
    %8 = arith.maximumf %6, %7 : vector<128x8xf32>
    %9 = vector.shape_cast %8 : vector<128x8xf32> to vector<2x64x8xf32>
    %c0_7 = arith.constant 0 : index
    %c0_8 = arith.constant 0 : index
    %c0_9 = arith.constant 0 : index
    %10 = vector.load %arg2[%c0_7, %c0_8, %c0_9] : memref<2x64x1xf32, #tpu.memory_space<vmem>>, vector<1x64x1xf32>
    %11 = vector.shape_cast %10 : vector<1x64x1xf32> to vector<64x1xf32>
    %12 = vector.shape_cast %11 : vector<64x1xf32> to vector<1x64x1xf32>
    %13 = vector.broadcast %12 : vector<1x64x1xf32> to vector<2x64x8xf32>
    %14 = arith.mulf %9, %13 : vector<2x64x8xf32>
    %15 = arith.truncf %14 : vector<2x64x8xf32> to vector<2x64x8xbf16>
    %16 = arith.truncf %9 : vector<2x64x8xf32> to vector<2x64x8xbf16>
    %c1 = arith.constant 1 : index
    %c0_10 = arith.constant 0 : index
    %c0_11 = arith.constant 0 : index
    %17 = vector.load %arg2[%c1, %c0_10, %c0_11] : memref<2x64x1xf32, #tpu.memory_space<vmem>>, vector<1x64x1xf32>
    %18 = vector.shape_cast %17 : vector<1x64x1xf32> to vector<64x1xf32>
    %19 = vector.shape_cast %18 : vector<64x1xf32> to vector<1x64x1xf32>
    %20 = vector.broadcast %19 : vector<1x64x1xf32> to vector<2x64x8xf32>
    %21 = arith.mulf %9, %20 : vector<2x64x8xf32>
    %22 = arith.truncf %21 : vector<2x64x8xf32> to vector<2x64x8xbf16>
    %cst_12 = arith.constant 0.000000e+00 : bf16
    %23 = vector.broadcast %cst_12 : bf16 to vector<2x9x8xbf16>
    %24 = vector.extract_strided_slice %15 {offsets = [0, 0, 0], sizes = [2, 55, 8], strides = [1, 1, 1]} : vector<2x64x8xbf16> to vector<2x55x8xbf16>
    %25 = tpu.concatenate %23, %24 in 1 : vector<2x9x8xbf16>, vector<2x55x8xbf16> -> vector<2x64x8xbf16>
    %cst_13 = arith.constant 0.000000e+00 : bf16
    %26 = vector.broadcast %cst_13 : bf16 to vector<2x8x8xbf16>
    %27 = vector.extract_strided_slice %16 {offsets = [0, 0, 0], sizes = [2, 56, 8], strides = [1, 1, 1]} : vector<2x64x8xbf16> to vector<2x56x8xbf16>
    %28 = tpu.concatenate %26, %27 in 1 : vector<2x8x8xbf16>, vector<2x56x8xbf16> -> vector<2x64x8xbf16>
    %cst_14 = arith.constant 0.000000e+00 : bf16
    %29 = vector.broadcast %cst_14 : bf16 to vector<2x7x8xbf16>
    %30 = vector.extract_strided_slice %22 {offsets = [0, 0, 0], sizes = [2, 57, 8], strides = [1, 1, 1]} : vector<2x64x8xbf16> to vector<2x57x8xbf16>
    %31 = tpu.concatenate %29, %30 in 1 : vector<2x7x8xbf16>, vector<2x57x8xbf16> -> vector<2x64x8xbf16>
    %cst_15 = arith.constant 0.000000e+00 : bf16
    %32 = vector.broadcast %cst_15 : bf16 to vector<2x1x8xbf16>
    %33 = vector.extract_strided_slice %15 {offsets = [0, 0, 0], sizes = [2, 63, 8], strides = [1, 1, 1]} : vector<2x64x8xbf16> to vector<2x63x8xbf16>
    %34 = tpu.concatenate %32, %33 in 1 : vector<2x1x8xbf16>, vector<2x63x8xbf16> -> vector<2x64x8xbf16>
    %cst_16 = arith.constant 0.000000e+00 : bf16
    %35 = vector.broadcast %cst_16 : bf16 to vector<2x1x8xbf16>
    %36 = vector.extract_strided_slice %22 {offsets = [0, 1, 0], sizes = [2, 63, 8], strides = [1, 1, 1]} : vector<2x64x8xbf16> to vector<2x63x8xbf16>
    %37 = tpu.concatenate %36, %35 in 1 : vector<2x63x8xbf16>, vector<2x1x8xbf16> -> vector<2x64x8xbf16>
    %cst_17 = arith.constant 0.000000e+00 : bf16
    %38 = vector.broadcast %cst_17 : bf16 to vector<2x7x8xbf16>
    %39 = vector.extract_strided_slice %15 {offsets = [0, 7, 0], sizes = [2, 57, 8], strides = [1, 1, 1]} : vector<2x64x8xbf16> to vector<2x57x8xbf16>
    %40 = tpu.concatenate %39, %38 in 1 : vector<2x57x8xbf16>, vector<2x7x8xbf16> -> vector<2x64x8xbf16>
    %cst_18 = arith.constant 0.000000e+00 : bf16
    %41 = vector.broadcast %cst_18 : bf16 to vector<2x8x8xbf16>
    %42 = vector.extract_strided_slice %16 {offsets = [0, 8, 0], sizes = [2, 56, 8], strides = [1, 1, 1]} : vector<2x64x8xbf16> to vector<2x56x8xbf16>
    %43 = tpu.concatenate %42, %41 in 1 : vector<2x56x8xbf16>, vector<2x8x8xbf16> -> vector<2x64x8xbf16>
    %cst_19 = arith.constant 0.000000e+00 : bf16
    %44 = vector.broadcast %cst_19 : bf16 to vector<2x9x8xbf16>
    %45 = vector.extract_strided_slice %22 {offsets = [0, 9, 0], sizes = [2, 55, 8], strides = [1, 1, 1]} : vector<2x64x8xbf16> to vector<2x55x8xbf16>
    %46 = tpu.concatenate %45, %44 in 1 : vector<2x55x8xbf16>, vector<2x9x8xbf16> -> vector<2x64x8xbf16>
    %47 = tpu.concatenate %25, %28, %31, %34, %16, %37, %40, %43, %46 in 2 : vector<2x64x8xbf16>, vector<2x64x8xbf16>, vector<2x64x8xbf16>, vector<2x64x8xbf16>, vector<2x64x8xbf16>, vector<2x64x8xbf16>, vector<2x64x8xbf16>, vector<2x64x8xbf16>, vector<2x64x8xbf16> -> vector<2x64x72xbf16>
    %48 = vector.shape_cast %47 : vector<2x64x72xbf16> to vector<128x72xbf16>
    %c0_20 = arith.constant 0 : index
    %c0_21 = arith.constant 0 : index
    %49 = vector.load %arg5[%c0_20, %c0_21] : memref<72x8xbf16, #tpu.memory_space<vmem>>, vector<72x8xbf16>
    %cst_22 = arith.constant dense<0.000000e+00> : vector<128x8xf32>
    %50 = tpu.matmul %48, %49, %cst_22 {dimension_numbers = #tpu.dot_dimension_numbers<[1], [0], [0], [1], [0, 0, 1, 1], [], []>} : vector<128x72xbf16>, vector<72x8xbf16>, vector<128x8xf32> -> vector<128x8xf32>
    %c0_23 = arith.constant 0 : index
    %c0_24 = arith.constant 0 : index
    %51 = vector.load %arg6[%c0_23, %c0_24] : memref<1x8xf32, #tpu.memory_space<vmem>>, vector<1x8xf32>
    %52 = vector.broadcast %51 : vector<1x8xf32> to vector<128x8xf32>
    %53 = arith.addf %50, %52 : vector<128x8xf32>
    %cst_25 = arith.constant 0.000000e+00 : f32
    %54 = vector.broadcast %cst_25 : f32 to vector<128x8xf32>
    %55 = arith.maximumf %53, %54 : vector<128x8xf32>
    %56 = arith.truncf %55 : vector<128x8xf32> to vector<128x8xbf16>
    %c0_26 = arith.constant 0 : index
    %c0_27 = arith.constant 0 : index
    %57 = vector.load %arg7[%c0_26, %c0_27] : memref<8x32xbf16, #tpu.memory_space<vmem>>, vector<8x32xbf16>
    %cst_28 = arith.constant dense<0.000000e+00> : vector<128x32xf32>
    %58 = tpu.matmul %56, %57, %cst_28 {dimension_numbers = #tpu.dot_dimension_numbers<[1], [0], [0], [1], [0, 0, 1, 1], [], []>} : vector<128x8xbf16>, vector<8x32xbf16>, vector<128x32xf32> -> vector<128x32xf32>
    %c0_29 = arith.constant 0 : index
    %c0_30 = arith.constant 0 : index
    %59 = vector.load %arg8[%c0_29, %c0_30] : memref<1x32xf32, #tpu.memory_space<vmem>>, vector<1x32xf32>
    %60 = vector.broadcast %59 : vector<1x32xf32> to vector<128x32xf32>
    %61 = arith.addf %58, %60 : vector<128x32xf32>
    %c0_31 = arith.constant 0 : index
    %c0_32 = arith.constant 0 : index
    %62 = vector.load %arg9[%c0_31, %c0_32] : memref<16x32xbf16, #tpu.memory_space<vmem>>, vector<16x32xbf16>
    %cst_33 = arith.constant dense<0.000000e+00> : vector<128x32xf32>
    %63 = tpu.matmul %1, %62, %cst_33 {dimension_numbers = #tpu.dot_dimension_numbers<[1], [0], [0], [1], [0, 0, 1, 1], [], []>} : vector<128x16xbf16>, vector<16x32xbf16>, vector<128x32xf32> -> vector<128x32xf32>
    %c0_34 = arith.constant 0 : index
    %c0_35 = arith.constant 0 : index
    %64 = vector.load %arg10[%c0_34, %c0_35] : memref<1x32xf32, #tpu.memory_space<vmem>>, vector<1x32xf32>
    %65 = vector.broadcast %64 : vector<1x32xf32> to vector<128x32xf32>
    %66 = arith.addf %63, %65 : vector<128x32xf32>
    %67 = arith.addf %61, %66 : vector<128x32xf32>
    %cst_36 = arith.constant 0.000000e+00 : f32
    %68 = vector.broadcast %cst_36 : f32 to vector<128x32xf32>
    %69 = arith.maximumf %67, %68 : vector<128x32xf32>
    %70 = arith.truncf %69 : vector<128x32xf32> to vector<128x32xbf16>
    %71 = vector.shape_cast %70 : vector<128x32xbf16> to vector<2x64x32xbf16>
    %c0_37 = arith.constant 0 : index
    %c0_38 = arith.constant 0 : index
    %c0_39 = arith.constant 0 : index
    %72 = vector.load %arg11[%c0_37, %c0_38, %c0_39] : memref<2x64x32xbf16, #tpu.memory_space<vmem>>, vector<2x64x32xbf16>
    tpu.vector_store %arg11[%c0_37, %c0_38, %c0_39], %71 {strides = array<i32>} : memref<2x64x32xbf16, #tpu.memory_space<vmem>>, vector<2x64x32xbf16>,
    return
  }
  func.func @transform_0(%arg0: i32) -> (i32, i32, i32) {
    %c0_i32 = arith.constant 0 : i32
    %c0_i32_0 = arith.constant 0 : i32
    %c0_i32_1 = arith.constant 0 : i32
    return %arg0, %c0_i32, %c0_i32_0 : i32, i32, i32
  }
  func.func @transform_1(%arg0: i32) -> (i32, i32, i32) {
    %c0_i32 = arith.constant 0 : i32
    %c0_i32_0 = arith.constant 0 : i32
    %c0_i32_1 = arith.constant 0 : i32
    %c0_i32_2 = arith.constant 0 : i32
    return %c0_i32, %c0_i32_0, %c0_i32_1 : i32, i32, i32
  }
  func.func @transform_2(%arg0: i32) -> (i32, i32) {
    %c0_i32 = arith.constant 0 : i32
    %c0_i32_0 = arith.constant 0 : i32
    %c0_i32_1 = arith.constant 0 : i32
    return %c0_i32, %c0_i32_0 : i32, i32
  }
  func.func @transform_3(%arg0: i32) -> (i32, i32) {
    %c0_i32 = arith.constant 0 : i32
    %c0_i32_0 = arith.constant 0 : i32
    %c0_i32_1 = arith.constant 0 : i32
    return %c0_i32, %c0_i32_0 : i32, i32
  }
  func.func @transform_4(%arg0: i32) -> (i32, i32) {
    %c0_i32 = arith.constant 0 : i32
    %c0_i32_0 = arith.constant 0 : i32
    %c0_i32_1 = arith.constant 0 : i32
    return %c0_i32, %c0_i32_0 : i32, i32
  }
  func.func @transform_5(%arg0: i32) -> (i32, i32) {
    %c0_i32 = arith.constant 0 : i32
    %c0_i32_0 = arith.constant 0 : i32
    %c0_i32_1 = arith.constant 0 : i32
    return %c0_i32, %c0_i32_0 : i32, i32
  }
  func.func @transform_6(%arg0: i32) -> (i32, i32) {
    %c0_i32 = arith.constant 0 : i32
    %c0_i32_0 = arith.constant 0 : i32
    %c0_i32_1 = arith.constant 0 : i32
    return %c0_i32, %c0_i32_0 : i32, i32
  }
  func.func @transform_7(%arg0: i32) -> (i32, i32) {
    %c0_i32 = arith.constant 0 : i32
    %c0_i32_0 = arith.constant 0 : i32
    %c0_i32_1 = arith.constant 0 : i32
    return %c0_i32, %c0_i32_0 : i32, i32
  }
  func.func @transform_8(%arg0: i32) -> (i32, i32) {
    %c0_i32 = arith.constant 0 : i32
    %c0_i32_0 = arith.constant 0 : i32
    %c0_i32_1 = arith.constant 0 : i32
    return %c0_i32, %c0_i32_0 : i32, i32
  }
  func.func @transform_9(%arg0: i32) -> (i32, i32) {
    %c0_i32 = arith.constant 0 : i32
    %c0_i32_0 = arith.constant 0 : i32
    %c0_i32_1 = arith.constant 0 : i32
    return %c0_i32, %c0_i32_0 : i32, i32
  }
  func.func @transform_10(%arg0: i32) -> (i32, i32, i32) {
    %c0_i32 = arith.constant 0 : i32
    %c0_i32_0 = arith.constant 0 : i32
    %c0_i32_1 = arith.constant 0 : i32
    return %arg0, %c0_i32, %c0_i32_0 : i32, i32, i32
  }
}

</mosaic_0001>

<bundles_post_ra>
// kernel: tpu_custom_call.1
= control target key start
LH: loop header
LB: loop body
LE: loop exit
PB: predicated region body
PF: predicated region fallthrough
CT: control target
= control target key end

     0   :  { %v1584_v0 = vmov 0   ;;  %vm104_vm0 = vcmask 130048   ;;  %vm520_vm1 = vcmask 1043456   ;;  %s1586_s22 = smov 32   ;;  %vm566_vm2 = vsmask.f32 3328  ;;  %s2595_s1 = inlined_call_operand.vmem [shape: f32[2,64,1], index: 1, kind: input, shape index: {}]   ;;  %s2596_s2 = inlined_call_operand.vmem [shape: bf16[16,8], index: 2, kind: input, shape index: {}]   ;;  %s2597_s0 = inlined_call_operand.vmem [shape: bf16[2,64,16], index: 0, kind: input, shape index: {}]   ;;  %s2598_s3 = inlined_call_operand.vmem [shape: f32[1,8], index: 3, kind: input, shape index: {}]   ;;  %s2599_s4 = inlined_call_operand.vmem [shape: bf16[72,8], index: 4, kind: input, shape index: {}]   ;;  %s2600_s5 = inlined_call_operand.vmem [shape: f32[1,8], index: 5, kind: input, shape index: {}]   ;;  %s2601_s6 = inlined_call_operand.vmem [shape: bf16[8,32], index: 6, kind: input, shape index: {}]   ;;  %s2602_s8 = inlined_call_operand.vmem [shape: bf16[16,32], index: 8, kind: input, shape index: {}]   ;;  %s2603_s7 = inlined_call_operand.vmem [shape: f32[1,32], index: 7, kind: input, shape index: {}]   ;;  %s2604_s9 = inlined_call_operand.vmem [shape: f32[1,32], index: 9, kind: input, shape index: {}]   ;;  %s2605_s10 = inlined_call_operand.vmem [shape: bf16[2,64,32], index: 10, kind: output, shape index: {}]  }
   0x1   :  { %1569 = vset.pattern.permute.xlu0 %v1584_v0  ;;  %1570 = vset.pattern.permute.xlu1 %v1584_v0  ;;  %v1494_v1 = vld [vmem:[%s2595_s1 + $0x40] sm:$0xff]  ;;  %v196_v5 = vld [vmem:[%s2595_s1 + $0x10] sm:$0xff]  ;;  %v1495_v6 = vld [vmem:[%s2595_s1 + $0x48] sm:$0xff]  ;;  %vm649_vm4 = vsmask.f32 256  ;;  %s1587_s23 = smov 56  }
   0x2   :  { %v194_v2 = vld [vmem:[%s2595_s1] sm:$0xff]  ;;  %301 = vperm.xlu0 %1569, %v1494_v1   ;;  %1571 = vset.pattern.permute.xlu2 %v1584_v0  ;;  %v195_v7 = vld [vmem:[%s2595_s1 + $0x8] sm:$0xff]  ;;  %v197_v8 = vld [vmem:[%s2595_s1 + $0x18] sm:$0xff]  ;;  %vm684_vm5 = vcmask 1040384   ;;  %s1588_s24 = smov 16   ;;  %s1590_s25 = smov 40  }
   0x3   :  { %v1554_v3 = vld [vmem:[%s2596_s2] sm:$0xff]  ;;  %204 = vperm.xlu1 %1570, %v194_v2   ;;  %214 = vperm.xlu2 %1571, %v196_v5   ;;  %v1496_v9 = vld [vmem:[%s2595_s1 + $0x50] sm:$0xff]  ;;  %v1497_v10 = vld [vmem:[%s2595_s1 + $0x58] sm:$0xff]  ;;  %s1589_s2 = smov 24   ;;  %vm688_vm7 = vsmask.f32 7424 }
   0x4   :  { %v1546_v4 = vld [vmem:[%s2597_s0] sm:$0xff]  ;;  %136 = vmatpush.bf16.msra.mxu0 %v1554_v3  ;;  %v1547_v11 = vld [vmem:[%s2597_s0 + $0x8] sm:$0xff]  ;;  %v1500_v16 = vld [vmem:[%s2595_s1 + $0x70] sm:$0xff]  ;;  %vm407_vm8 = vsmask.f32 4352  ;;  %s1591_s26 = smov 48  }
   0x5   :  { %v1498_v12 = vld [vmem:[%s2595_s1 + $0x60] sm:$0xff]  ;;  %v199_v14 = vld [vmem:[%s2595_s1 + $0x28] sm:$0xff]  ;;  %v200_v17 = vld [vmem:[%s2595_s1 + $0x30] sm:$0xff]  ;;  %s1592_s27 = smov 64   ;;  %vm480_vm9 = vcmask 1044480   ;;  %vm713_vm11 = vcmask 1047552  }
   0x6   :  { %v198_v13 = vld [vmem:[%s2595_s1 + $0x20] sm:$0xff]  ;;  %v1499_v15 = vld [vmem:[%s2595_s1 + $0x68] sm:$0xff]  ;;  %v1548_v18 = vld [vmem:[%s2597_s0 + $0x10] sm:$0xff]  ;;  %vm963_vm13 = vcmask 64512   ;;  %vm1004_vm14 = vcmask 195584   ;;  %vm1021_vm15 = vcmask 261120  }
   0x7   :  { %1486 = vmatmul.msk.bf16.vlgmr.msra.gmra.mxu0 %vm104_vm0, %v1546_v4  ;;  %v201_v19 = vld [vmem:[%s2595_s1 + $0x38] sm:$0xff]  ;;  %v1550_v22 = vld [vmem:[%s2597_s0 + $0x20] sm:$0xff]  ;;  %v1551_v23 = vld [vmem:[%s2597_s0 + $0x28] sm:$0xff] }
   0x8   :  { %v1501_v20 = vld [vmem:[%s2595_s1 + $0x78] sm:$0xff]  ;;  %v1552_v24 = vld [vmem:[%s2597_s0 + $0x30] sm:$0xff]  ;;  %v1734_v26 = vld [vmem:[%s2598_s3] ss:$0 sm:$0xff]  ;;  %s1585_s3 = smov 8  }
   0x9   :  { %v1549_v21 = vld [vmem:[%s2597_s0 + $0x18] sm:$0xff]  ;;  %vm1773_vm3 = vmand %vm520_vm1, %vm566_vm2 }
   0xa   :  { %306 = vperm.xlu0 %1569, %v1495_v6   ;;  %v1553_v25 = vld [vmem:[%s2597_s0 + $0x38] sm:$0xff]  ;;  %vm1797_vm6 = vmand %vm684_vm5, %vm649_vm4  ;;  %vm1038_vm5 = vcmask 326656  }
   0xb   :  { %209 = vperm.xlu1 %1570, %v195_v7   ;;  %219 = vperm.xlu2 %1571, %v197_v8   ;;  %vm1995_vm10 = vmand %vm480_vm9, %vm407_vm8  ;;  %vm1089_vm9 = vcmask 523264  }
   0xc   :  { %vm2011_vm12 = vmand %vm713_vm11, %vm688_vm7  ;;  %vm1146_vm11 = vcmask 588800  }
  0x12   :  { %311 = vperm.xlu0 %1569, %v1496_v9  }
  0x13   :  { %316 = vperm.xlu1 %1570, %v1497_v10   ;;  %321 = vperm.xlu2 %1571, %v1498_v12  }
  0x17   :  { %1487 = vmatmul.msk.bf16.gmra.mxu0 %vm104_vm0, %v1547_v11 }
  0x1a   :  { %224 = vperm.xlu0 %1569, %v198_v13  }
  0x1b   :  { %229 = vperm.xlu1 %1570, %v199_v14   ;;  %326 = vperm.xlu2 %1571, %v1499_v15  }
  0x22   :  { %331 = vperm.xlu0 %1569, %v1500_v16  }
  0x23   :  { %234 = vperm.xlu1 %1570, %v200_v17   ;;  %239 = vperm.xlu2 %1571, %v201_v19  }
  0x27   :  { %1488 = vmatmul.msk.bf16.gmra.mxu0 %vm104_vm0, %v1548_v18 }
  0x2a   :  { %336 = vperm.xlu0 %1569, %v1501_v20  }
  0x37   :  { %1489 = vmatmul.msk.bf16.gmra.mxu0 %vm104_vm0, %v1549_v21 }
  0x47   :  { %1490 = vmatmul.msk.bf16.gmra.mxu0 %vm104_vm0, %v1550_v22 }
  0x57   :  { %1491 = vmatmul.msk.bf16.gmra.mxu0 %vm104_vm0, %v1551_v23 }
  0x5d   :  { %v1750_v45 = vpop.permute.xlu2 %214 }
  0x65   :  { %v1762_v2 = vpop.permute.xlu2 %219 }
  0x67   :  { %1492 = vmatmul.msk.bf16.gmra.mxu0 %vm104_vm0, %v1552_v24 }
  0x74   :  { %v1737_v29 = vpop.permute.xlu0 %301 }
  0x75   :  { %v1739_v30 = vpop.permute.xlu1 %204 }
  0x77   :  { %1493 = vmatmul.msk.bf16.gmra.mxu0 %vm104_vm0, %v1553_v25 }
  0x7c   :  { %v1745_v41 = vpop.permute.xlu0 %306 }
  0x7d   :  { %v1747_v42 = vpop.permute.xlu1 %209 }
  0x84   :  { %v138_v27 = vpop.f32.mrf.mxu0  ;;  %v1766_v5 = vpop.permute.xlu0 %311 }
  0x85   :  { %v139_v28 = vadd.f32 %v1734_v26, %v138_v27  ;;  %v1784_v15 = vpop.permute.xlu1 %316 }
  0x87   :  { %v178_v31 = vmax.f32 %v139_v28, 0.0 }
  0x89   :  { %v274_v32 = vpack.c.bf16 %v178_v31, %v178_v31  ;;  %v242_v34 = vmul.f32 %v1739_v30, %v178_v31  ;;  %v339_v35 = vmul.f32 %v1737_v29, %v178_v31 }
  0x8b   :  { %v498_v33 = vunpack.c.l.b16 %v274_v32  ;;  %v258_v43 = vpack.c.bf16 %v242_v34, %v242_v34  ;;  %v355_v44 = vpack.c.bf16 %v339_v35, %v339_v35  ;;  %v1804_v35 = vpop.permute.xlu2 %321 }
  0x8c   :  { %v140_v36 = vpop.f32.mrf.mxu0 }
  0x8d   :  { %v141_v37 = vadd.f32 %v1734_v26, %v140_v36  ;;  %v512_v38 = vpack.c.b16 %v498_v33, %v498_v33  ;;  %v385_v52 = vunpack.c.l.b16 %v258_v43  ;;  %v542_v53 = vunpack.c.l.b16 %v355_v44 }
  0x8f   :  { %v179_v39 = vmax.f32 %v141_v37, 0.0  ;;  %v523_v40 = vsel %vm520_vm1, 0, %v512_v38 }
  0x90   :  { %815 = vrot.lane.b32.xlu1 %v523_v40, %s1585_s3 }
  0x91   :  { %v243_v46 = vmul.f32 %v1747_v42, %v179_v39  ;;  %v275_v47 = vpack.c.bf16 %v179_v39, %v179_v39  ;;  %v340_v48 = vmul.f32 %v1745_v41, %v179_v39 }
  0x93   :  { %v259_v49 = vpack.c.bf16 %v243_v46, %v243_v46  ;;  %v356_v50 = vpack.c.bf16 %v340_v48, %v340_v48  ;;  %v499_v51 = vunpack.c.l.b16 %v275_v47 }
  0x94   :  { %v143_v54 = vpop.f32.mrf.mxu0 }
  0x95   :  { %v386_v55 = vunpack.c.l.b16 %v259_v49  ;;  %v1754_v56 = vunpack.c.l.b16 %v356_v50  ;;  %v144_v57 = vadd.f32 %v1734_v26, %v143_v54  ;;  %v867_v58 = vpack.c.b16 %v499_v51, %v498_v33 }
  0x97   :  { %v558_v59 = vpack.c.b16 %v1754_v56, %v542_v53  ;;  %v180_v60 = vmax.f32 %v144_v57, 0.0  ;;  %v1758_v61 = vpack.c.b16 %v386_v55, %v385_v52  ;;  %v1815_v57 = vpop.permute.xlu0 %224 }
  0x98   :  { %875 = vrot.lane.b32.xlu1 %v867_v58, %s1586_s22 }
  0x99   :  { %v276_v62 = vpack.c.bf16 %v180_v60, %v180_v60  ;;  %v568_v63 = vshrl.u32 %v558_v59, 16  ;;  %v571_v0 = vshll.u32 %v558_v59, 16  ;;  %v409_v1 = vshrl.u32 %v1758_v61, 16 }
  0x9a   :  { %v341_v8 = vmul.f32 %v1766_v5, %v180_v60  ;;  %v244_v16 = vmul.f32 %v1750_v45, %v180_v60  ;;  %v412_v18 = vshll.u32 %v1758_v61, 16 }
  0x9b   :  { %v1764_v3 = vunpack.c.l.b16 %v276_v62  ;;  %v570_v4 = vrot.slane %v568_v63, 4  ;;  %v573_v7 = vrot.slane %v571_v0, 5  ;;  %v1781_v13 = vrot.slane %v409_v1, 7  ;;  %v1820_v62 = vpop.permute.xlu1 %229 }
  0x9c   :  { %v145_v6 = vpop.f32.mrf.mxu0  ;;  %v357_v19 = vpack.c.bf16 %v341_v8, %v341_v8  ;;  %v260_v27 = vpack.c.bf16 %v244_v16, %v244_v16  ;;  %v689_v39 = vrot.slane %v571_v0, 1 }
  0x9d   :  { %v146_v9 = vadd.f32 %v1734_v26, %v145_v6  ;;  %v513_v10 = vpack.c.b16 %v1764_v3, %v499_v51  ;;  %v1777_v12 = vor.u32 %v573_v7, %v570_v4  ;;  %v651_v22 = vor.u32 %v1781_v13, %v412_v18  ;;  %v1828_v6 = vpop.permute.xlu2 %326 }
  0x9e   :  { %v544_v31 = vunpack.c.l.b16 %v357_v19  ;;  %v387_v43 = vunpack.c.l.b16 %v260_v27  ;;  %v690_v49 = vor.u32 %v689_v39, %v568_v63 }
  0x9f   :  { %v181_v14 = vmax.f32 %v146_v9, 0.0  ;;  %817 = vrot.lane.b32.xlu0 %v513_v10, %s1585_s3  ;;  %v641_v17 = vsel %vm1773_vm3, 0, %v1777_v12  ;;  %v686_v36 = vsel %vm1797_vm6, 0, %v651_v22  ;;  %v1853_v39 = vpop.permute.xlu0 %331 }
  0xa0   :  { %929 = vrot.lane.b32.xlu1 %v513_v10, %s1587_s23  ;;  %833 = vrot.lane.b32.xlu2 %v641_v17, %s1588_s24  ;;  %v1845_v27 = vpack.c.b16 %v544_v31, %v1754_v56 }
  0xa1   :  { %v245_v20 = vmul.f32 %v1762_v2, %v181_v14  ;;  %v342_v21 = vmul.f32 %v1784_v15, %v181_v14  ;;  %v277_v32 = vpack.c.bf16 %v181_v14, %v181_v14 }
  0xa3   :  { %v261_v23 = vpack.c.bf16 %v245_v20, %v245_v20  ;;  %v358_v24 = vpack.c.bf16 %v342_v21, %v342_v21  ;;  %v501_v46 = vunpack.c.l.b16 %v277_v32 }
  0xa4   :  { %v148_v28 = vpop.f32.mrf.mxu0 }
  0xa5   :  { %v1801_v33 = vunpack.c.l.b16 %v358_v24  ;;  %v149_v34 = vadd.f32 %v1734_v26, %v148_v28  ;;  %v388_v37 = vunpack.c.l.b16 %v261_v23  ;;  %v868_v60 = vpack.c.b16 %v501_v46, %v1764_v3 }
  0xa6   :  { %v414_v23 = vrot.slane %v412_v18, 4 }
  0xa7   :  { %v1809_v38 = vpack.c.b16 %v1801_v33, %v544_v31  ;;  %851 = vrot.lane.b32.xlu0 %v686_v36, %s1589_s2  ;;  %v182_v40 = vmax.f32 %v149_v34, 0.0  ;;  %v400_v48 = vpack.c.b16 %v388_v37, %v387_v43  ;;  %v411_v34 = vrot.slane %v409_v1, 3  ;;  %v1860_v31 = vpop.permute.xlu1 %234 }
  0xa9   :  { %v579_v44 = vshll.u32 %v1809_v38, 16  ;;  %v576_v47 = vshrl.u32 %v1809_v38, 16  ;;  %v278_v52 = vpack.c.bf16 %v182_v40, %v182_v40  ;;  %v343_v53 = vmul.f32 %v1804_v35, %v182_v40 }
  0xaa   :  { %v417_v4 = vshrl.u32 %v400_v48, 16  ;;  %v246_v7 = vmul.f32 %v1815_v57, %v182_v40  ;;  %v420_v16 = vshll.u32 %v400_v48, 16  ;;  %v750_v48 = vshll.u32 %v1845_v27, 16 }
  0xab   :  { %v691_v50 = vrot.slane %v579_v44, 1  ;;  %v581_v51 = vrot.slane %v579_v44, 5  ;;  %v578_v55 = vrot.slane %v576_v47, 4  ;;  %v359_v8 = vpack.c.bf16 %v343_v53, %v343_v53 }
  0xac   :  { %v150_v54 = vpop.f32.mrf.mxu0  ;;  %v1834_v9 = vunpack.c.l.b16 %v278_v52  ;;  %v1841_v20 = vrot.slane %v417_v4, 7  ;;  %v262_v21 = vpack.c.bf16 %v246_v7, %v246_v7  ;;  %v419_v37 = vrot.slane %v417_v4, 3 }
  0xad   :  { %v151_v58 = vadd.f32 %v1734_v26, %v150_v54  ;;  %v692_v59 = vsel %vm688_vm7, %v690_v49, %v691_v50  ;;  %v1823_v63 = vor.u32 %v581_v51, %v578_v55  ;;  %v546_v22 = vunpack.c.l.b16 %v359_v8 }
  0xae   :  { %893 = vrot.lane.b32.xlu2 %v692_v59, %s1590_s25  ;;  %v422_v38 = vrot.slane %v420_v16, 4  ;;  %v653_v56 = vor.u32 %v1841_v20, %v420_v16  ;;  %v389_v43 = vunpack.c.l.b16 %v262_v21  ;;  %v693_v51 = vor.u32 %v691_v50, %v576_v47 }
  0xaf   :  { %v1825_v0 = vmax.f32 %v151_v58, 0.0  ;;  %877 = vrot.lane.b32.xlu0 %v868_v60, %s1586_s22  ;;  %v583_v3 = vsel %vm566_vm2, %v1777_v12, %v1823_v63  ;;  %v514_v12 = vpack.c.b16 %v1834_v9, %v501_v46  ;;  %v1863_v61 = vpack.c.b16 %v546_v22, %v1801_v33 }
  0xb0   :  { %835 = vrot.lane.b32.xlu1 %v583_v3, %s1588_s24  ;;  %v1867_v46 = vor.u32 %v414_v23, %v411_v34  ;;  %v1872_v52 = vor.u32 %v422_v38, %v419_v37  ;;  %v654_v58 = vsel %vm649_vm4, %v1781_v13, %v653_v56 }
  0xb1   :  { %v247_v10 = vmul.f32 %v1820_v62, %v1825_v0  ;;  %v344_v14 = vmul.f32 %v1828_v6, %v1825_v0  ;;  %v279_v33 = vpack.c.bf16 %v1825_v0, %v1825_v0  ;;  %v755_v7 = vshll.u32 %v1863_v61, 16 }
  0xb2   :  { %v1890_v13 = vsel %vm407_vm8, %v1867_v46, %v1872_v52 }
  0xb3   :  { %v263_v17 = vpack.c.bf16 %v247_v10, %v247_v10  ;;  %v360_v19 = vpack.c.bf16 %v344_v14, %v344_v14  ;;  %v757_v37 = vrot.slane %v755_v7, 1 }
  0xb4   :  { %v153_v24 = vpop.f32.mrf.mxu0 }
  0xb5   :  { %v1847_v28 = vunpack.c.l.b16 %v360_v19  ;;  %v154_v32 = vadd.f32 %v1734_v26, %v153_v24  ;;  %v390_v36 = vunpack.c.l.b16 %v263_v17  ;;  %v752_v19 = vrot.slane %v750_v48, 1 }
  0xb6   :  { %819 = vrot.lane.b32.xlu2 %v514_v12, %s1585_s3  ;;  %v748_v24 = vshrl.u32 %v1845_v27, 16 }
  0xb7   :  { %v1856_v18 = vpack.c.b16 %v1847_v28, %v546_v22  ;;  %v184_v40 = vmax.f32 %v154_v32, 0.0  ;;  %931 = vrot.lane.b32.xlu0 %v514_v12, %s1587_s23  ;;  %v1870_v49 = vpack.c.b16 %v390_v36, %v389_v43  ;;  %v503_v22 = vunpack.c.l.b16 %v279_v33  ;;  %v1901_v12 = vpop.permute.xlu2 %239  ;;  %v1903_v32 = vpop.permute.xlu0 %336 }
  0xb9   :  { %v248_v1 = vmul.f32 %v1860_v31, %v184_v40  ;;  %v588_v44 = vshll.u32 %v1856_v18, 16  ;;  %v585_v53 = vshrl.u32 %v1856_v18, 16  ;;  %v280_v59 = vpack.c.bf16 %v184_v40, %v184_v40 }
  0xba   :  { %v345_v60 = vmul.f32 %v1853_v39, %v184_v40  ;;  %v426_v10 = vshrl.u32 %v1870_v49, 16  ;;  %v429_v14 = vshll.u32 %v1870_v49, 16 }
  0xbb   :  { %v264_v54 = vpack.c.bf16 %v248_v1, %v248_v1  ;;  %v694_v55 = vrot.slane %v588_v44, 1  ;;  %v587_v47 = vrot.slane %v585_v53, 4  ;;  %v590_v0 = vrot.slane %v588_v44, 5 }
  0xbc   :  { %v155_v4 = vpop.f32.mrf.mxu0  ;;  %v361_v21 = vpack.c.bf16 %v345_v60, %v345_v60  ;;  %v1898_v23 = vunpack.c.l.b16 %v280_v59  ;;  %v428_v43 = vrot.slane %v426_v10, 3  ;;  %v431_v1 = vrot.slane %v429_v14, 4 }
  0xbd   :  { %v391_v50 = vunpack.c.l.b16 %v264_v54  ;;  %v156_v8 = vadd.f32 %v1734_v26, %v155_v4  ;;  %v695_v3 = vsel %vm688_vm7, %v693_v51, %v694_v55  ;;  %v1905_v38 = vor.u32 %v590_v0, %v587_v47 }
  0xbe   :  { %895 = vrot.lane.b32.xlu1 %v695_v3, %s1590_s25  ;;  %853 = vrot.lane.b32.xlu2 %v654_v58, %s1589_s2  ;;  %v753_v44 = vor.u32 %v752_v19, %v748_v24  ;;  %v548_v49 = vunpack.c.l.b16 %v361_v21  ;;  %v515_v54 = vpack.c.b16 %v1898_v23, %v503_v22  ;;  %v1916_v60 = vrot.slane %v426_v10, 7 }
  0xbf   :  { %v402_v16 = vpack.c.b16 %v391_v50, %v391_v50  ;;  %v1894_v17 = vmax.f32 %v156_v8, 0.0  ;;  %911 = vrot.lane.b32.xlu0 %v1890_v13, %s1591_s26  ;;  %v592_v59 = vsel %vm566_vm2, %v1823_v63, %v1905_v38  ;;  %v1920_v47 = vor.u32 %v431_v1, %v428_v43 }
  0xc0   :  { %v758_v58 = vsel %vm688_vm7, %v753_v44, %v757_v37  ;;  %v741_v3 = vpack.c.b16 %v548_v49, %v1847_v28  ;;  %v656_v10 = vor.u32 %v1916_v60, %v429_v14 }
  0xc1   :  { %v435_v34 = vshrl.u32 %v402_v16, 16  ;;  %v438_v36 = vshll.u32 %v402_v16, 16  ;;  %v249_v40 = vmul.f32 %v1901_v12, %v1894_v17  ;;  %v346_v56 = vmul.f32 %v1903_v32, %v1894_v17 }
  0xc3   :  { %v437_v48 = vrot.slane %v435_v34, 3  ;;  %v440_v27 = vrot.slane %v438_v36, 4  ;;  %v362_v51 = vpack.c.bf16 %v346_v56, %v346_v56  ;;  %v265_v4 = vpack.c.bf16 %v249_v40, %v249_v40 }
  0xc4   :  { %v158_v33 = vpop.f32.mrf.mxu0  ;;  %v869_v34 = vpack.c.b16 %v503_v22, %v1834_v9  ;;  %v696_v36 = vor.u32 %v694_v55, %v585_v53  ;;  %v763_v40 = vshll.u32 %v741_v3, 16  ;;  %v657_v56 = vsel %vm649_vm4, %v1841_v20, %v656_v10 }
  0xc5   :  { %v549_v7 = vunpack.c.l.b16 %v362_v51  ;;  %v441_v8 = vor.u32 %v440_v27, %v437_v48  ;;  %v645_v16 = vunpack.c.l.b16 %v265_v4  ;;  %v759_v53 = vshrl.u32 %v1863_v61, 16 }
  0xc6   :  { %821 = vrot.lane.b32.xlu1 %v515_v54, %s1585_s3  ;;  %947 = vrot.lane.b32.xlu2 %v758_v58, %s1592_s27  ;;  %v765_v9 = vrot.slane %v763_v40, 1  ;;  %v767_v55 = vshrl.u32 %v741_v3, 16  ;;  %v281_v48 = vpack.c.bf16 %v1894_v17, %v1894_v17 }
  0xc7   :  { %837 = vrot.lane.b32.xlu0 %v592_v59, %s1588_s24  ;;  %v1924_v0 = vpack.c.b16 %v549_v7, %v548_v49  ;;  %v1928_v63 = vsel %vm407_vm8, %v1920_v47, %v441_v8  ;;  %v1931_v19 = vpack.c.b16 %v549_v7, %v549_v7  ;;  %v647_v43 = vpack.c.b16 %v645_v16, %v391_v50 }
  0xc8   :  { %v159_v50 = vadd.f32 %v1734_v26, %v158_v33  ;;  %v761_v44 = vor.u32 %v759_v53, %v757_v37  ;;  %v769_v49 = vor.u32 %v767_v55, %v765_v9  ;;  %v731_v37 = vunpack.c.l.b16 %v281_v48 }
  0xc9   :  { %v597_v21 = vshll.u32 %v1924_v0, 16  ;;  %v771_v1 = vshll.u32 %v1931_v19, 16  ;;  %v659_v20 = vshrl.u32 %v647_v43, 16  ;;  %v662_v33 = vshll.u32 %v647_v43, 16 }
  0xca   :  { %v766_v58 = vsel %vm688_vm7, %v761_v44, %v765_v9  ;;  %v186_v4 = vmax.f32 %v159_v50, 0.0  ;;  %v594_v7 = vshrl.u32 %v1924_v0, 16  ;;  %v1970_v16 = vsel %vm407_vm8, %v1872_v52, %v1920_v47 }
  0xcb   :  { %v1937_v28 = vrot.slane %v597_v21, 1  ;;  %v1949_v22 = vrot.slane %v771_v1, 1  ;;  %v661_v59 = vrot.slane %v659_v20, 7  ;;  %v599_v40 = vrot.slane %v597_v21, 5 }
  0xcc   :  { %v160_v24 = vpop.f32.mrf.mxu0  ;;  %v347_v3 = vmul.f32 %v1737_v29, %v186_v4  ;;  %v733_v21 = vpack.c.b16 %v731_v37, %v731_v37  ;;  %v282_v1 = vpack.c.bf16 %v186_v4, %v186_v4 }
  0xcd   :  { %v698_v14 = vsel %vm688_vm7, %v696_v36, %v1937_v28  ;;  %v161_v18 = vadd.f32 %v1734_v26, %v160_v24  ;;  %v774_v61 = vsel %vm688_vm7, %v769_v49, %v1949_v22  ;;  %v664_v8 = vor.u32 %v662_v33, %v661_v59 }
  0xce   :  { %855 = vrot.lane.b32.xlu1 %v657_v56, %s1589_s2  ;;  %879 = vrot.lane.b32.xlu2 %v869_v34, %s1586_s22  ;;  %v596_v36 = vrot.slane %v594_v7, 4  ;;  %v363_v0 = vpack.c.bf16 %v347_v3, %v347_v3  ;;  %v736_v50 = vsel %vm520_vm1, %v733_v21, 0  ;;  %v505_v49 = vunpack.c.l.b16 %v282_v1 }
  0xcf   :  { %897 = vrot.lane.b32.xlu0 %v698_v14, %s1590_s25  ;;  %v1954_v51 = vmax.f32 %v161_v18, 0.0  ;;  %v665_v29 = vsel %vm649_vm4, %v1916_v60, %v664_v8 }
  0xd0   :  { %v600_v14 = vor.u32 %v599_v40, %v596_v36  ;;  %v550_v18 = vunpack.c.l.b16 %v363_v0  ;;  %v516_v8 = vpack.c.b16 %v505_v49, %v505_v49 }
  0xd1   :  { %v348_v17 = vmul.f32 %v1745_v41, %v1954_v51  ;;  %v717_v41 = vrot.slane %v659_v20, 3 }
  0xd2   :  { %v601_v44 = vsel %vm566_vm2, %v1905_v38, %v600_v14 }
  0xd3   :  { %v364_v24 = vpack.c.bf16 %v348_v17, %v348_v17 }
  0xd4   :  { %v163_v27 = vpop.f32.mrf.mxu0 }
  0xd5   :  { %v164_v56 = vadd.f32 %v1734_v26, %v163_v27  ;;  %v1980_v52 = vunpack.c.l.b16 %v364_v24  ;;  %v251_v27 = vmul.f32 %v1747_v42, %v1954_v51 }
  0xd6   :  { %949 = vrot.lane.b32.xlu1 %v766_v58, %s1592_s27  ;;  %933 = vrot.lane.b32.xlu2 %v515_v54, %s1587_s23  ;;  %v870_v54 = vpack.c.b16 %v731_v37, %v1898_v23  ;;  %v718_v23 = vrot.slane %v662_v33, 4  ;;  %v250_v58 = vmul.f32 %v1739_v30, %v186_v4  ;;  %v283_v30 = vpack.c.bf16 %v1954_v51, %v1954_v51 }
  0xd7   :  { %951 = vrot.lane.b32.xlu0 %v774_v61, %s1592_s27  ;;  %v1984_v53 = vmax.f32 %v164_v56, 0.0  ;;  %v1987_v55 = vpack.c.b16 %v1980_v52, %v550_v18  ;;  %v699_v61 = vor.u32 %v1937_v28, %v594_v7  ;;  %v267_v17 = vpack.c.bf16 %v251_v27, %v251_v27 }
  0xd8   :  { %v719_v9 = vor.u32 %v718_v23, %v717_v41  ;;  %v525_v51 = vsel %vm520_vm1, 0, %v516_v8  ;;  %v506_v14 = vunpack.c.l.b16 %v283_v30 }
  0xd9   :  { %v349_v38 = vmul.f32 %v1766_v5, %v1984_v53  ;;  %v603_v37 = vshrl.u32 %v1987_v55, 16  ;;  %v606_v33 = vshll.u32 %v1987_v55, 16  ;;  %v715_v7 = vsel %vm2011_vm12, %v699_v61, 0 }
  0xda   :  { %v720_v4 = vsel %vm407_vm8, %v1920_v47, %v719_v9  ;;  %v393_v40 = vunpack.c.l.b16 %v267_v17  ;;  %v775_v47 = vshrl.u32 %v1931_v19, 16  ;;  %v252_v18 = vmul.f32 %v1750_v45, %v1984_v53 }
  0xdb   :  { %v365_v3 = vpack.c.bf16 %v349_v38, %v349_v38  ;;  %v608_v36 = vrot.slane %v606_v33, 5  ;;  %v871_v27 = vpack.c.b16 %v506_v14, %v505_v49  ;;  %v700_v17 = vrot.slane %v606_v33, 1 }
  0xdc   :  { %v165_v10 = vpop.f32.mrf.mxu0  ;;  %v777_v21 = vor.u32 %v775_v47, %v1949_v22  ;;  %v268_v38 = vpack.c.bf16 %v252_v18, %v252_v18 }
  0xdd   :  { %v166_v34 = vadd.f32 %v1734_v26, %v165_v10  ;;  %v266_v10 = vpack.c.bf16 %v250_v58, %v250_v58 }
  0xde   :  { %881 = vrot.lane.b32.xlu1 %v870_v54, %s1586_s22  ;;  %913 = vrot.lane.b32.xlu2 %v1970_v16, %s1591_s26 }
  0xdf   :  { %857 = vrot.lane.b32.xlu0 %v665_v29, %s1589_s2  ;;  %v1982_v43 = vmax.f32 %v166_v34, 0.0  ;;  %v605_v34 = vrot.slane %v603_v37, 4  ;;  %v2033_v29 = vunpack.c.l.b16 %v365_v3  ;;  %v392_v0 = vunpack.c.l.b16 %v266_v10 }
  0xe1   :  { %v350_v20 = vmul.f32 %v1784_v15, %v1982_v43  ;;  %v727_v15 = vsel %vm1995_vm10, %v719_v9, 0  ;;  %v253_v56 = vmul.f32 %v1762_v2, %v1982_v43  ;;  %v2049_v9 = vor.u32 %v608_v36, %v605_v34 }
  0xe3   :  { %v366_v59 = vpack.c.bf16 %v350_v20, %v350_v20  ;;  %v2055_v20 = vpack.c.b16 %v393_v40, %v392_v0  ;;  %v269_v22 = vpack.c.bf16 %v253_v56, %v253_v56  ;;  %v642_v45 = vsel %vm1773_vm3, 0, %v2049_v9 }
  0xe4   :  { %v168_v60 = vpop.f32.mrf.mxu0 }
  0xe5   :  { %v169_v5 = vadd.f32 %v1734_v26, %v168_v60  ;;  %v2024_v54 = vunpack.c.l.b16 %v366_v59  ;;  %v284_v60 = vpack.c.bf16 %v1984_v53, %v1984_v53  ;;  %v444_v49 = vshrl.u32 %v2055_v20, 16 }
  0xe6   :  { %935 = vrot.lane.b32.xlu1 %v736_v50, %s1587_s23  ;;  %839 = vrot.lane.b32.xlu2 %v601_v44, %s1588_s24  ;;  %v811_v44 = vsel %vm1773_vm3, %v777_v21, 0  ;;  %v395_v8 = vunpack.c.l.b16 %v269_v22 }
  0xe7   :  { %917 = vrot.lane.b32.xlu0 %v727_v15, %s1591_s26  ;;  %v2035_v41 = vmax.f32 %v169_v5, 0.0  ;;  %v2045_v1 = vpack.c.b16 %v2024_v54, %v2033_v29  ;;  %v2087_v33 = vrot.slane %v444_v49, 7 }
  0xe9   :  { %v254_v2 = vmul.f32 %v1815_v57, %v2035_v41  ;;  %v614_v53 = vshll.u32 %v2045_v1, 16  ;;  %v2070_v57 = vunpack.c.l.b16 %v284_v60  ;;  %v351_v3 = vmul.f32 %v1804_v35, %v2035_v41 }
  0xea   :  { %v285_v35 = vpack.c.bf16 %v1982_v43, %v1982_v43 }
  0xeb   :  { %v270_v61 = vpack.c.bf16 %v254_v2, %v254_v2  ;;  %v2081_v30 = vrot.slane %v614_v53, 1  ;;  %v367_v47 = vpack.c.bf16 %v351_v3, %v351_v3 }
  0xec   :  { %v170_v28 = vpop.f32.mrf.mxu0  ;;  %v508_v2 = vunpack.c.l.b16 %v285_v35 }
  0xed   :  { %v171_v24 = vadd.f32 %v1734_v26, %v170_v28  ;;  %v447_v28 = vshll.u32 %v2055_v20, 16  ;;  %v396_v34 = vunpack.c.l.b16 %v270_v61  ;;  %v554_v18 = vunpack.c.l.b16 %v367_v47 }
  0xee   :  { %915 = vrot.lane.b32.xlu1 %v720_v4, %s1591_s26  ;;  %899 = vrot.lane.b32.xlu2 %v715_v7, %s1590_s25  ;;  %v394_v4 = vunpack.c.l.b16 %v268_v38 }
  0xef   :  { %v2037_v23 = vmax.f32 %v171_v24, 0.0  ;;  %823 = vrot.lane.b32.xlu0 %v525_v51, %s1585_s3  ;;  %v517_v24 = vpack.c.b16 %v2070_v57, %v506_v14  ;;  %v286_v51 = vpack.c.bf16 %v2035_v41, %v2035_v41  ;;  %v616_v14 = vrot.slane %v614_v53, 5 }
  0xf0   :  { %v2093_v40 = vpack.c.b16 %v395_v8, %v394_v4  ;;  %v667_v41 = vor.u32 %v2087_v33, %v447_v28  ;;  %v2162_v47 = vpack.c.b16 %v554_v18, %v2024_v54  ;;  %v1557_v54 = vld [vmem:[%s2599_s4 + $0x10] sm:$0xff] }
  0xf1   :  { %v255_v19 = vmul.f32 %v1820_v62, %v2037_v23  ;;  %v352_v58 = vmul.f32 %v1828_v6, %v2037_v23  ;;  %v611_v6 = vshrl.u32 %v2045_v1, 16  ;;  %v2117_v22 = vunpack.c.l.b16 %v286_v51 }
  0xf2   :  { %v687_v8 = vsel %vm1797_vm6, 0, %v667_v41  ;;  %v449_v1 = vrot.slane %v447_v28, 4  ;;  %vm1055_vm6 = vcmask 392192  }
  0xf3   :  { %v271_v62 = vpack.c.bf16 %v255_v19, %v255_v19  ;;  %v368_v7 = vpack.c.bf16 %v352_v58, %v352_v58  ;;  %v613_v0 = vrot.slane %v611_v6, 4 }
  0xf4   :  { %v173_v50 = vpop.f32.mrf.mxu0 }
  0xf5   :  { %v174_v15 = vadd.f32 %v1734_v26, %v173_v50  ;;  %v397_v5 = vunpack.c.l.b16 %v271_v62  ;;  %v2105_v19 = vunpack.c.l.b16 %v368_v7  ;;  %v452_v50 = vshrl.u32 %v2093_v40, 16 }
  0xf6   :  { %841 = vrot.lane.b32.xlu1 %v642_v45, %s1588_s24  ;;  %953 = vrot.lane.b32.xlu2 %v811_v44, %s1592_s27  ;;  %v1114_v45 = vld [vmem:[%s2599_s4 + $0x20] sm:$0xf] }
  0xf7   :  { %v2073_v59 = vmax.f32 %v174_v15, 0.0  ;;  %883 = vrot.lane.b32.xlu0 %v871_v27, %s1586_s22  ;;  %v2099_v56 = vpack.c.b16 %v397_v5, %v396_v34  ;;  %v2120_v27 = vor.u32 %v616_v14, %v613_v0  ;;  %v2128_v53 = vpack.c.b16 %v2105_v19, %v554_v18 }
  0xf8   :  { %v1136_v58 = vunpack.c.l.b16 %v1114_v45  ;;  %v2136_v3 = vrot.slane %v452_v50, 7  ;;  %v872_v18 = vpack.c.b16 %v508_v2, %v2070_v57  ;;  %v786_v45 = vshll.u32 %v2162_v47, 16 }
  0xf9   :  { %v256_v10 = vmul.f32 %v1860_v31, %v2073_v59  ;;  %v701_v31 = vor.u32 %v700_v17, %v603_v37  ;;  %v461_v62 = vshrl.u32 %v2099_v56, 16  ;;  %v464_v15 = vshll.u32 %v2099_v56, 16 }
  0xfa   :  { %v2115_v60 = vpop.permute.xlu2 %833  ;;  %v2132_v17 = vpack.c.b16 %v2117_v22, %v508_v2  ;;  %v1141_v5 = vpack.c.b16 %v1136_v58, %v1136_v58  ;;  %v623_v25 = vshll.u32 %v2128_v53, 16 }
  0xfb   :  { %v272_v36 = vpack.c.bf16 %v256_v10, %v256_v10  ;;  %v703_v43 = vsel %vm688_vm7, %v701_v31, %v2081_v30  ;;  %v618_v10 = vsel %vm566_vm2, %v2049_v9, %v2120_v27  ;;  %v463_v4 = vrot.slane %v461_v62, 3 }
  0xfc   :  { %v175_v37 = vpop.f32.mrf.mxu0  ;;  %v466_v7 = vrot.slane %v464_v15, 4  ;;  %v1164_v34 = vsel %vm520_vm1, %v1141_v5, 0  ;;  %v743_v9 = vpack.c.b16 %v2033_v29, %v1980_v52  ;;  %v2171_v14 = vrot.slane %v623_v25, 1 }
  0xfd   :  { %v2101_v21 = vunpack.c.l.b16 %v272_v36  ;;  %v176_v38 = vadd.f32 %v1734_v26, %v175_v37  ;;  %v455_v36 = vshll.u32 %v2093_v40, 16  ;;  %1169 = vmatpush.bf16.msra.mxu1 %v1164_v34  ;;  %v2193_v2 = vrot.slane %v461_v62, 7 }
  0xfe   :  { %901 = vrot.lane.b32.xlu1 %v703_v43, %s1590_s25  ;;  %825 = vrot.lane.b32.xlu2 %v517_v24, %s1585_s3  ;;  %v2165_v43 = vor.u32 %v466_v7, %v463_v4  ;;  %v779_v62 = vshrl.u32 %v743_v9, 16 }
  0xff   :  { %v406_v55 = vpack.c.b16 %v2101_v21, %v2101_v21  ;;  %937 = vrot.lane.b32.xlu0 %v517_v24, %s1587_s23  ;;  %v353_v24 = vmul.f32 %v1853_v39, %v2073_v59  ;;  %v2145_v35 = vmax.f32 %v176_v38, 0.0  ;;  %v1558_v39 = vld [vmem:[%s2599_s4 + $0x18] sm:$0xff]  ;;  %v669_v0 = vor.u32 %v2136_v3, %v455_v36 }
 0x100   :  { %v454_v38 = vrot.slane %v452_v50, 3  ;;  %v457_v58 = vrot.slane %v455_v36, 4  ;;  %v672_v20 = vor.u32 %v2193_v2, %v464_v15 }
 0x101   :  { %v470_v44 = vshrl.u32 %v406_v55, 16  ;;  %v473_v61 = vshll.u32 %v406_v55, 16  ;;  %v369_v29 = vpack.c.bf16 %v353_v24, %v353_v24  ;;  %v257_v40 = vmul.f32 %v1901_v12, %v2145_v35  ;;  %1170 = vmatpush.bf16.msra.mxu1 %v1558_v39  ;;  %v1555_v24 = vld [vmem:[%s2599_s4] sm:$0xff] }
 0x102   :  { %v781_v55 = vshll.u32 %v743_v9, 16  ;;  %v2180_v41 = vpop.permute.xlu1 %815  ;;  %v704_v12 = vor.u32 %v2081_v30, %v611_v6  ;;  %v446_v30 = vrot.slane %v444_v49, 3  ;;  %v458_v4 = vor.u32 %v457_v58, %v454_v38 }
 0x103   :  { %v472_v26 = vrot.slane %v470_v44, 3  ;;  %v475_v31 = vrot.slane %v473_v61, 4  ;;  %v670_v44 = vsel %vm649_vm4, %v2087_v33, %v669_v0  ;;  %v556_v61 = vunpack.c.l.b16 %v369_v29  ;;  %v1556_v33 = vld [vmem:[%s2599_s4 + $0x8] sm:$0xff] }
 0x104   :  { %v706_v57 = vsel %vm688_vm7, %v704_v12, %v2171_v14  ;;  %v783_v6 = vrot.slane %v781_v55, 1  ;;  %v354_v34 = vmul.f32 %v1903_v32, %v2145_v35  ;;  %v673_v36 = vsel %vm649_vm4, %v2136_v3, %v672_v20 }
 0x105   :  { %v476_v52 = vor.u32 %v475_v31, %v472_v26  ;;  %1171 = vmatpush.bf16.msra.mxu1 %v1557_v54  ;;  %v2208_v28 = vpack.c.b16 %v556_v61, %v2105_v19  ;;  %v2213_v26 = vor.u32 %v449_v1, %v446_v30  ;;  %v620_v0 = vshrl.u32 %v2128_v53, 16 }
 0x106   :  { %827 = vrot.lane.b32.xlu1 %v2132_v17, %s1585_s3  ;;  %859 = vrot.lane.b32.xlu2 %v687_v8, %s1589_s2  ;;  %v273_v8 = vpack.c.bf16 %v257_v40, %v257_v40  ;;  %v784_v49 = vor.u32 %v783_v6, %v779_v62  ;;  %v370_v31 = vpack.c.bf16 %v354_v34, %v354_v34 }
 0x107   :  { %843 = vrot.lane.b32.xlu0 %v618_v10, %s1588_s24  ;;  %v2178_v37 = vsel %vm407_vm8, %v2165_v43, %v476_v52  ;;  %v788_v10 = vrot.slane %v786_v45, 1  ;;  %v2223_v19 = vsel %vm407_vm8, %v2213_v26, %v458_v4  ;;  %v794_v32 = vshll.u32 %v2208_v28, 16 }
 0x108   :  { %v2159_v51 = vpop.permute.xlu2 %893  ;;  %v646_v7 = vunpack.c.l.b16 %v273_v8  ;;  %v790_v52 = vshrl.u32 %v2162_v47, 16  ;;  %v287_v3 = vpack.c.bf16 %v2037_v23, %v2037_v23  ;;  %v2249_v12 = vsel %vm407_vm8, %v458_v4, %v2165_v43 }
 0x109   :  { %1172 = vmatpush.bf16.msra.mxu1 %v1556_v33  ;;  %v789_v9 = vsel %vm688_vm7, %v784_v49, %v788_v10  ;;  %v2241_v29 = vrot.slane %v794_v32, 1  ;;  %v625_v45 = vrot.slane %v623_v25, 5  ;;  %v288_v6 = vpack.c.bf16 %v2073_v59, %v2073_v59 }
 0x10a   :  { %v2226_v56 = vpack.c.b16 %v646_v7, %v2101_v21  ;;  %v2228_v15 = vpop.permute.xlu1 %875  ;;  %v792_v54 = vor.u32 %v790_v52, %v788_v10  ;;  %v510_v25 = vunpack.c.l.b16 %v287_v3  ;;  %v289_v34 = vpack.c.bf16 %v2145_v35, %v2145_v35 }
 0x10b   :  { %v511_v4 = vunpack.c.l.b16 %v288_v6 }
 0x10c   :  { %v675_v40 = vshrl.u32 %v2226_v56, 16  ;;  %v678_v55 = vshll.u32 %v2226_v56, 16  ;;  %v797_v47 = vsel %vm688_vm7, %v792_v54, %v2241_v29  ;;  %v873_v30 = vpack.c.b16 %v510_v25, %v2117_v22 }
 0x10d   :  { %1173 = vmatpush.bf16.msra.mxu1 %v1555_v24  ;;  %v707_v24 = vor.u32 %v2171_v14, %v620_v0  ;;  %v798_v14 = vshrl.u32 %v2208_v28, 16 }
 0x10e   :  { %861 = vrot.lane.b32.xlu1 %v670_v44, %s1589_s2  ;;  %885 = vrot.lane.b32.xlu2 %v872_v18, %s1586_s22  ;;  %v557_v18 = vunpack.c.l.b16 %v370_v31  ;;  %v622_v44 = vrot.slane %v620_v0, 4  ;;  %v721_v23 = vrot.slane %v675_v40, 3  ;;  %v722_v38 = vrot.slane %v678_v55, 4 }
 0x10f   :  { %903 = vrot.lane.b32.xlu0 %v706_v57, %s1590_s25 }
 0x110   :  { %v2203_v50 = vpop.permute.xlu2 %819  ;;  %v2264_v8 = vpack.c.b16 %v557_v18, %v556_v61  ;;  %v626_v1 = vor.u32 %v625_v45, %v622_v44  ;;  %v482_v61 = vsel %vm1995_vm10, 0, %v1867_v46  ;;  %v2289_v7 = vpack.c.b16 %v557_v18, %v557_v18 }
 0x111   :  { %v2205_v5 = vpop.permute.xlu0 %817  ;;  %v966_v22 = vsel %vm963_vm13, %v482_v61, %v2180_v41 }
 0x112   :  { %v930_v58 = vpop.permute.xlu1 %929  ;;  %v627_v33 = vsel %vm566_vm2, %v2120_v27, %v626_v1  ;;  %v632_v62 = vshll.u32 %v2264_v8, 16  ;;  %v629_v49 = vshrl.u32 %v2264_v8, 16  ;;  %v802_v52 = vshll.u32 %v2289_v7, 16 }
 0x114   :  { %v708_v20 = vrot.slane %v632_v62, 1  ;;  %v631_v32 = vrot.slane %v629_v49, 4  ;;  %v634_v31 = vrot.slane %v632_v62, 5  ;;  %v804_v18 = vrot.slane %v802_v52, 1 }
 0x116   :  { %955 = vrot.lane.b32.xlu1 %v789_v9, %s1592_s27  ;;  %919 = vrot.lane.b32.xlu2 %v2223_v19, %s1591_s26  ;;  %v519_v9 = vpack.c.b16 %v511_v4, %v510_v25  ;;  %v677_v25 = vrot.slane %v675_v40, 7 }
 0x117   :  { %863 = vrot.lane.b32.xlu0 %v673_v36, %s1589_s2  ;;  %v709_v36 = vsel %vm688_vm7, %v707_v24, %v708_v20 }
 0x118   :  { %v2237_v39 = vpop.permute.xlu2 %853  ;;  %v680_v6 = vor.u32 %v678_v55, %v677_v25  ;;  %v806_v55 = vshrl.u32 %v2289_v7, 16 }
 0x119   :  { %v852_v21 = vpop.permute.xlu0 %851 }
 0x11a   :  { %v681_v62 = vsel %vm649_vm4, %v2193_v2, %v680_v6 }
 0x11e   :  { %921 = vrot.lane.b32.xlu1 %v2249_v12, %s1591_s26  ;;  %939 = vrot.lane.b32.xlu2 %v2132_v17, %s1587_s23  ;;  %v2268_v17 = vor.u32 %v722_v38, %v721_v23 }
 0x11f   :  { %957 = vrot.lane.b32.xlu0 %v797_v47, %s1592_s27  ;;  %v800_v47 = vor.u32 %v798_v14, %v2241_v29 }
 0x120   :  { %v948_v53 = vpop.permute.xlu2 %947  ;;  %v724_v59 = vsel %vm407_vm8, %v2165_v43, %v2268_v17  ;;  %v989_v43 = vsel %vm104_vm0, %v966_v22, %v2115_v60  ;;  %vm1072_vm8 = vcmask 457728   ;;  %v728_v7 = vsel %vm1995_vm10, %v2268_v17, 0 }
 0x121   :  { %v2266_v57 = vpop.permute.xlu0 %877  ;;  %v1006_v41 = vsel %vm1004_vm14, %v989_v43, %v852_v21  ;;  %v732_v21 = vunpack.c.l.b16 %v289_v34  ;;  %v805_v38 = vsel %vm688_vm7, %v800_v47, %v804_v18  ;;  %v972_v17 = vsel %vm963_vm13, %v1970_v16, %v2203_v50 }
 0x122   :  { %v836_v27 = vpop.permute.xlu1 %835  ;;  %v1023_v3 = vsel %vm1021_vm15, %v1006_v41, %v2228_v15  ;;  %v635_v15 = vor.u32 %v634_v31, %v631_v32 }
 0x123   :  { %v1040_v0 = vsel %vm1038_vm5, %v1023_v3, %v2159_v51  ;;  %v874_v51 = vpack.c.b16 %v732_v21, %v511_v4 }
 0x124   :  { %v636_v28 = vsel %vm566_vm2, %v626_v1, %v635_v15  ;;  %v734_v1 = vpack.c.b16 %v732_v21, %v732_v21 }
 0x126   :  { %887 = vrot.lane.b32.xlu1 %v873_v30, %s1586_s22  ;;  %845 = vrot.lane.b32.xlu2 %v627_v33, %s1588_s24  ;;  %v969_v30 = vsel %vm963_vm13, %v1890_v13, %v2205_v5  ;;  %v738_v56 = vsel %vm520_vm1, %v734_v1, 0 }
 0x127   :  { %923 = vrot.lane.b32.xlu0 %v724_v59, %s1591_s26  ;;  %v991_v40 = vsel %vm104_vm0, %v969_v30, %v836_v27  ;;  %v808_v59 = vor.u32 %v806_v55, %v804_v18 }
 0x128   :  { %v2287_v10 = vpop.permute.xlu2 %879  ;;  %v1008_v13 = vsel %vm1004_vm14, %v991_v40, %v2237_v39 }
 0x129   :  { %v2291_v46 = vpop.permute.xlu0 %931  ;;  %v1025_v2 = vsel %vm1021_vm15, %v1008_v13, %v2266_v57  ;;  %v812_v4 = vsel %vm1773_vm3, %v808_v59, 0 }
 0x12e   :  { %941 = vrot.lane.b32.xlu1 %v519_v9, %s1587_s23  ;;  %905 = vrot.lane.b32.xlu2 %v709_v36, %s1590_s25 }
 0x12f   :  { %829 = vrot.lane.b32.xlu0 %v519_v9, %s1585_s3 }
 0x130   :  { %v896_v60 = vpop.permute.xlu1 %895  ;;  %v2307_v35 = vpop.permute.xlu2 %933 }
 0x131   :  { %v912_v54 = vpop.permute.xlu0 %911  ;;  %v1042_v22 = vsel %vm1038_vm5, %v1025_v2, %v896_v60 }
 0x132   :  { %v1057_v44 = vsel %vm1055_vm6, %v1040_v0, %v912_v54 }
 0x133   :  { %v1074_v45 = vsel %vm1072_vm8, %v1057_v44, %v930_v58 }
 0x134   :  { %v1091_v23 = vsel %vm1089_vm9, %v1074_v45, %v948_v53  ;;  %v710_v53 = vor.u32 %v708_v20, %v629_v49 }
 0x135   :  { %1518 = vmatmul.msk.bf16.vlgmr.msra.gmra.mxu1 %vm1146_vm11, %v1091_v23 }
 0x136   :  { %847 = vrot.lane.b32.xlu1 %v636_v28, %s1588_s24  ;;  %959 = vrot.lane.b32.xlu2 %v805_v38, %s1592_s27  ;;  %v716_v33 = vsel %vm2011_vm12, %v710_v53, 0 }
 0x137   :  { %889 = vrot.lane.b32.xlu0 %v874_v51, %s1586_s22 }
 0x138   :  { %v822_v58 = vpop.permute.xlu1 %821  ;;  %v914_v29 = vpop.permute.xlu2 %913 }
 0x139   :  { %v838_v8 = vpop.permute.xlu0 %837  ;;  %v1059_v27 = vsel %vm1055_vm6, %v1042_v22, %v914_v29  ;;  %v975_v50 = vsel %vm963_vm13, %v1928_v63, %v822_v58  ;;  %v483_v58 = vsel %vm1995_vm10, 0, %v2213_v26 }
 0x13a   :  { %v1076_v57 = vsel %vm1072_vm8, %v1059_v27, %v2291_v46  ;;  %v993_v9 = vsel %vm104_vm0, %v972_v17, %v838_v8  ;;  %v1239_v17 = vld [vmem:[%s2601_s6] sm:$0xf] }
 0x13e   :  { %907 = vrot.lane.b32.xlu1 %v716_v33, %s1590_s25  ;;  %865 = vrot.lane.b32.xlu2 %v681_v62, %s1589_s2 }
 0x13f   :  { %943 = vrot.lane.b32.xlu0 %v738_v56, %s1587_s23 }
 0x140   :  { %v856_v5 = vpop.permute.xlu1 %855  ;;  %v840_v61 = vpop.permute.xlu2 %839 }
 0x141   :  { %v898_v42 = vpop.permute.xlu0 %897  ;;  %v1010_v32 = vsel %vm1004_vm14, %v993_v9, %v856_v5  ;;  %v995_v54 = vsel %vm104_vm0, %v975_v50, %v840_v61 }
 0x142   :  { %v1027_v46 = vsel %vm1021_vm15, %v1010_v32, %v2287_v10  ;;  %v1269_v32 = vsel %vm520_vm1, %v1239_v17, 0 }
 0x143   :  { %v1044_v52 = vsel %vm1038_vm5, %v1027_v46, %v898_v42  ;;  %1278 = vmatpush.bf16.msra.mxu2 %v1269_v32  ;;  %v1576_v46 = vld [vmem:[%s2597_s0] sm:$0xff]  ;;  %v1583_v32 = vld [vmem:[%s2597_s0 + $0x38] sm:$0xff] }
 0x146   :  { %961 = vrot.lane.b32.xlu1 %v812_v4, %s1592_s27  ;;  %925 = vrot.lane.b32.xlu2 %v728_v7, %s1591_s26 }
 0x148   :  { %v950_v39 = vpop.permute.xlu1 %949  ;;  %v900_v20 = vpop.permute.xlu2 %899 }
 0x149   :  { %v952_v49 = vpop.permute.xlu0 %951  ;;  %v1093_v43 = vsel %vm1089_vm9, %v1076_v57, %v950_v39 }
 0x14a   :  { %1519 = vmatmul.msk.bf16.gmra.mxu1 %vm1146_vm11, %v1093_v43 }
 0x150   :  { %v882_v11 = vpop.permute.xlu1 %881  ;;  %v954_v41 = vpop.permute.xlu2 %953 }
 0x151   :  { %v858_v24 = vpop.permute.xlu0 %857 }
 0x152   :  { %v1012_v10 = vsel %vm1004_vm14, %v995_v54, %v858_v24 }
 0x153   :  { %v1029_v18 = vsel %vm1021_vm15, %v1012_v10, %v882_v11 }
 0x154   :  { %v1046_v45 = vsel %vm1038_vm5, %v1029_v18, %v900_v20 }
 0x158   :  { %v936_v34 = vpop.permute.xlu1 %935  ;;  %v826_v31 = vpop.permute.xlu2 %825 }
 0x159   :  { %v918_v36 = vpop.permute.xlu0 %917  ;;  %v981_v5 = vsel %vm963_vm13, %v2223_v19, %v826_v31 }
 0x160   :  { %v916_v3 = vpop.permute.xlu1 %915  ;;  %v860_v0 = vpop.permute.xlu2 %859 }
 0x161   :  { %v1061_v60 = vsel %vm1055_vm6, %v1044_v52, %v916_v3  ;;  %v824_v14 = vpop.permute.xlu0 %823 }
 0x162   :  { %v1078_v21 = vsel %vm1072_vm8, %v1061_v60, %v2307_v35  ;;  %v1063_v35 = vsel %vm1055_vm6, %v1046_v45, %v918_v36  ;;  %v978_v8 = vsel %vm963_vm13, %v483_v58, %v824_v14 }
 0x163   :  { %v1095_v16 = vsel %vm1089_vm9, %v1078_v21, %v952_v49  ;;  %v1080_v28 = vsel %vm1072_vm8, %v1063_v35, %v936_v34  ;;  %v1559_v34 = vld [vmem:[%s2602_s8] sm:$0xff]  ;;  %v1577_v35 = vld [vmem:[%s2597_s0 + $0x8] sm:$0xff] }
 0x164   :  { %1520 = vmatmul.msk.bf16.gmra.mxu1 %vm1146_vm11, %v1095_v16  ;;  %v1097_v38 = vsel %vm1089_vm9, %v1080_v28, %v954_v41  ;;  %1339 = vmatpush.bf16.msra.mxu3 %v1559_v34 }
 0x167   :  { %1538 = vmatmul.msk.bf16.vlgmr.msra.gmra.mxu3 %vm104_vm0, %v1576_v46 }
 0x168   :  { %v842_v15 = vpop.permute.xlu1 %841  ;;  %v886_v47 = vpop.permute.xlu2 %885 }
 0x169   :  { %v884_v44 = vpop.permute.xlu0 %883  ;;  %v997_v53 = vsel %vm104_vm0, %v978_v8, %v842_v15 }
 0x16a   :  { %v1014_v6 = vsel %vm1004_vm14, %v997_v53, %v860_v0 }
 0x16b   :  { %v1031_v30 = vsel %vm1021_vm15, %v1014_v6, %v884_v44  ;;  %v1578_v6 = vld [vmem:[%s2597_s0 + $0x10] sm:$0xff] }
 0x170   :  { %v902_v23 = vpop.permute.xlu1 %901  ;;  %v920_v51 = vpop.permute.xlu2 %919 }
 0x171   :  { %v938_v63 = vpop.permute.xlu0 %937  ;;  %v1048_v33 = vsel %vm1038_vm5, %v1031_v30, %v902_v23  ;;  %v2436_v23 = vld [vmem:[%s2600_s5] ss:$0 sm:$0xff] }
 0x172   :  { %v1065_v56 = vsel %vm1055_vm6, %v1048_v33, %v920_v51 }
 0x173   :  { %v1082_v55 = vsel %vm1072_vm8, %v1065_v56, %v938_v63 }
 0x174   :  { %1521 = vmatmul.msk.bf16.gmra.mxu1 %vm1146_vm11, %v1097_v38 }
 0x177   :  { %1539 = vmatmul.msk.bf16.gmra.mxu3 %vm104_vm0, %v1577_v35 }
 0x178   :  { %v828_v25 = vpop.permute.xlu1 %827  ;;  %v940_v62 = vpop.permute.xlu2 %939 }
 0x179   :  { %v844_v29 = vpop.permute.xlu0 %843  ;;  %v984_v43 = vsel %vm963_vm13, %v2249_v12, %v828_v25 }
 0x17a   :  { %v999_v61 = vsel %vm104_vm0, %v981_v5, %v844_v29 }
 0x180   :  { %v862_v1 = vpop.permute.xlu1 %861  ;;  %v846_v59 = vpop.permute.xlu2 %845 }
 0x181   :  { %v904_v40 = vpop.permute.xlu0 %903  ;;  %v1016_v42 = vsel %vm1004_vm14, %v999_v61, %v862_v1  ;;  %v1001_v11 = vsel %vm104_vm0, %v984_v43, %v846_v59  ;;  %v1582_v43 = vld [vmem:[%s2597_s0 + $0x30] sm:$0xff] }
 0x182   :  { %v1033_v2 = vsel %vm1021_vm15, %v1016_v42, %v886_v47 }
 0x183   :  { %v1050_v4 = vsel %vm1038_vm5, %v1033_v2, %v904_v40 }
 0x187   :  { %1540 = vmatmul.msk.bf16.gmra.mxu3 %vm104_vm0, %v1578_v6 }
 0x188   :  { %v956_v48 = vpop.permute.xlu1 %955  ;;  %v906_v39 = vpop.permute.xlu2 %905 }
 0x189   :  { %v864_v26 = vpop.permute.xlu0 %863  ;;  %v1099_v13 = vsel %vm1089_vm9, %v1082_v55, %v956_v48  ;;  %v1579_v48 = vld [vmem:[%s2597_s0 + $0x18] sm:$0xff] }
 0x18a   :  { %1522 = vmatmul.msk.bf16.gmra.mxu1 %vm1146_vm11, %v1099_v13  ;;  %v1018_v41 = vsel %vm1004_vm14, %v1001_v11, %v864_v26  ;;  %v1580_v13 = vld [vmem:[%s2597_s0 + $0x20] sm:$0xff] }
 0x190   :  { %v922_v22 = vpop.permute.xlu1 %921  ;;  %v960_v9 = vpop.permute.xlu2 %959 }
 0x191   :  { %v958_v27 = vpop.permute.xlu0 %957  ;;  %v1067_v7 = vsel %vm1055_vm6, %v1050_v4, %v922_v22  ;;  %v1581_v4 = vld [vmem:[%s2597_s0 + $0x28] sm:$0xff] }
 0x192   :  { %v1084_v20 = vsel %vm1072_vm8, %v1067_v7, %v940_v62 }
 0x193   :  { %v1101_v49 = vsel %vm1089_vm9, %v1084_v20, %v958_v27 }
 0x197   :  { %1541 = vmatmul.msk.bf16.gmra.mxu3 %vm104_vm0, %v1579_v48 }
 0x198   :  { %v888_v57 = vpop.permute.xlu1 %887  ;;  %v866_v21 = vpop.permute.xlu2 %865 }
 0x199   :  { %v924_v19 = vpop.permute.xlu0 %923  ;;  %v1035_v24 = vsel %vm1021_vm15, %v1018_v41, %v888_v57 }
 0x19a   :  { %1523 = vmatmul.msk.bf16.gmra.mxu1 %vm1146_vm11, %v1101_v49  ;;  %v1052_v12 = vsel %vm1038_vm5, %v1035_v24, %v906_v39 }
 0x19b   :  { %v1069_v52 = vsel %vm1055_vm6, %v1052_v12, %v924_v19 }
 0x1a0   :  { %v942_v36 = vpop.permute.xlu1 %941  ;;  %v926_v45 = vpop.permute.xlu2 %925 }
 0x1a1   :  { %v830_v31 = vpop.permute.xlu0 %829  ;;  %v1086_v3 = vsel %vm1072_vm8, %v1069_v52, %v942_v36 }
 0x1a2   :  { %v1103_v14 = vsel %vm1089_vm9, %v1086_v3, %v960_v9  ;;  %v987_v16 = vsel %vm963_vm13, %v2178_v37, %v830_v31 }
 0x1a7   :  { %1542 = vmatmul.msk.bf16.gmra.mxu3 %vm104_vm0, %v1580_v13 }
 0x1a8   :  { %v848_v60 = vpop.permute.xlu1 %847 }
 0x1a9   :  { %v1003_v50 = vsel %vm104_vm0, %v987_v16, %v848_v60  ;;  %v890_v0 = vpop.permute.xlu0 %889 }
 0x1aa   :  { %1524 = vmatmul.msk.bf16.gmra.mxu1 %vm1146_vm11, %v1103_v14  ;;  %v1020_v54 = vsel %vm1004_vm14, %v1003_v50, %v866_v21 }
 0x1ab   :  { %v1037_v15 = vsel %vm1021_vm15, %v1020_v54, %v890_v0 }
 0x1b0   :  { %v908_v10 = vpop.permute.xlu1 %907 }
 0x1b1   :  { %v1054_v18 = vsel %vm1038_vm5, %v1037_v15, %v908_v10  ;;  %v944_v47 = vpop.permute.xlu0 %943 }
 0x1b2   :  { %v1175_v44 = vpop.f32.mrf.mxu1  ;;  %v1071_v37 = vsel %vm1055_vm6, %v1054_v18, %v926_v45 }
 0x1b3   :  { %v1088_v28 = vsel %vm1072_vm8, %v1071_v37, %v944_v47  ;;  %v1176_v38 = vadd.f32 %v2436_v23, %v1175_v44  ;;  %v2490_v37 = vld [vmem:[%s2604_s9] ss:$0 sm:$0xff] }
 0x1b5   :  { %v1215_v29 = vmax.f32 %v1176_v38, 0.0 }
 0x1b7   :  { %1543 = vmatmul.msk.bf16.gmra.mxu3 %vm104_vm0, %v1581_v4 }
 0x1b8   :  { %v962_v63 = vpop.permute.xlu1 %961 }
 0x1b9   :  { %v1105_v51 = vsel %vm1089_vm9, %v1088_v28, %v962_v63  ;;  %v2496_v28 = vld [vmem:[%s2603_s7] ss:$0 sm:$0xff] }
 0x1ba   :  { %v1177_v25 = vpop.f32.mrf.mxu1  ;;  %1525 = vmatmul.msk.bf16.gmra.mxu1 %vm1146_vm11, %v1105_v51 }
 0x1bb   :  { %v1178_v58 = vadd.f32 %v2436_v23, %v1177_v25 }
 0x1bd   :  { %v1216_v8 = vmax.f32 %v1178_v58, 0.0 }
 0x1bf   :  { %v1231_v53 = vpack.c.bf16 %v1216_v8, %v1215_v29 }
 0x1c1   :  { %1526 = vmatmul.msk.bf16.vlgmr.msra.gmra.mxu2 %vm963_vm13, %v1231_v53 }
 0x1c7   :  { %v1180_v1 = vpop.f32.mrf.mxu1  ;;  %1544 = vmatmul.msk.bf16.gmra.mxu3 %vm104_vm0, %v1582_v43 }
 0x1c8   :  { %v1181_v30 = vadd.f32 %v2436_v23, %v1180_v1 }
 0x1ca   :  { %v1217_v62 = vmax.f32 %v1181_v30, 0.0 }
 0x1cf   :  { %v1182_v40 = vpop.f32.mrf.mxu1 }
 0x1d0   :  { %v1183_v33 = vadd.f32 %v2436_v23, %v1182_v40 }
 0x1d2   :  { %v1218_v56 = vmax.f32 %v1183_v33, 0.0 }
 0x1d4   :  { %v1232_v55 = vpack.c.bf16 %v1218_v56, %v1217_v62 }
 0x1d6   :  { %1527 = vmatmul.msk.bf16.gmra.mxu2 %vm963_vm13, %v1232_v55 }
 0x1d7   :  { %1545 = vmatmul.msk.bf16.gmra.mxu3 %vm104_vm0, %v1583_v32  ;;  %vm1429_vm0 = vcmask 257024  }
 0x1e1   :  { %v1185_v26 = vpop.f32.mrf.mxu1 }
 0x1e2   :  { %v1186_v5 = vadd.f32 %v2436_v23, %v1185_v26 }
 0x1e4   :  { %v1219_v59 = vmax.f32 %v1186_v5, 0.0 }
 0x1e9   :  { %v1187_v61 = vpop.f32.mrf.mxu1 }
 0x1ea   :  { %v1188_v42 = vadd.f32 %v2436_v23, %v1187_v61  ;;  %v1341_v44 = vpop.f32.mrf.mxu3 }
 0x1eb   :  { %v1342_v51 = vadd.f32 %v2490_v37, %v1341_v44 }
 0x1ec   :  { %v1220_v2 = vmax.f32 %v1188_v42, 0.0 }
 0x1ee   :  { %v1233_v22 = vpack.c.bf16 %v1220_v2, %v1219_v59 }
 0x1f0   :  { %1528 = vmatmul.msk.bf16.gmra.mxu2 %vm963_vm13, %v1233_v22 }
 0x1f1   :  { %v1190_v27 = vpop.f32.mrf.mxu1 }
 0x1f2   :  { %v1191_v7 = vadd.f32 %v2436_v23, %v1190_v27  ;;  %v1343_v53 = vpop.f32.mrf.mxu3 }
 0x1f3   :  { %v1344_v1 = vadd.f32 %v2490_v37, %v1343_v53 }
 0x1f4   :  { %v1221_v57 = vmax.f32 %v1191_v7, 0.0 }
 0x1f9   :  { %v1192_v39 = vpop.f32.mrf.mxu1 }
 0x1fa   :  { %v1193_v20 = vadd.f32 %v2436_v23, %v1192_v39  ;;  %v1346_v62 = vpop.f32.mrf.mxu3 }
 0x1fb   :  { %v1347_v48 = vadd.f32 %v2490_v37, %v1346_v62 }
 0x1fc   :  { %v1222_v19 = vmax.f32 %v1193_v20, 0.0 }
 0x1fe   :  { %v1234_v49 = vpack.c.bf16 %v1222_v19, %v1221_v57 }
 0x200   :  { %1529 = vmatmul.msk.bf16.gmra.mxu2 %vm963_vm13, %v1234_v49 }
 0x202   :  { %v1348_v13 = vpop.f32.mrf.mxu3 }
 0x203   :  { %v1349_v2 = vadd.f32 %v2490_v37, %v1348_v13 }
 0x207   :  { %v1195_v11 = vpop.f32.mrf.mxu1 }
 0x208   :  { %v1196_v41 = vadd.f32 %v2436_v23, %v1195_v11 }
 0x20a   :  { %v1223_v34 = vmax.f32 %v1196_v41, 0.0  ;;  %v1351_v27 = vpop.f32.mrf.mxu3 }
 0x20b   :  { %v1352_v19 = vadd.f32 %v2490_v37, %v1351_v27 }
 0x20f   :  { %v1197_v24 = vpop.f32.mrf.mxu1 }
 0x210   :  { %v1198_v17 = vadd.f32 %v2436_v23, %v1197_v24 }
 0x212   :  { %v1224_v9 = vmax.f32 %v1198_v17, 0.0  ;;  %v1353_v57 = vpop.f32.mrf.mxu3 }
 0x214   :  { %v1235_v36 = vpack.c.bf16 %v1224_v9, %v1223_v34  ;;  %v1354_v9 = vadd.f32 %v2490_v37, %v1353_v57 }
 0x216   :  { %1530 = vmatmul.msk.bf16.gmra.mxu2 %vm963_vm13, %v1235_v36 }
 0x217   :  { %v1200_v31 = vpop.f32.mrf.mxu1 }
 0x218   :  { %v1201_v12 = vadd.f32 %v2436_v23, %v1200_v31 }
 0x21a   :  { %v1225_v3 = vmax.f32 %v1201_v12, 0.0  ;;  %v1356_v11 = vpop.f32.mrf.mxu3 }
 0x21f   :  { %v1202_v46 = vpop.f32.mrf.mxu1 }
 0x220   :  { %v1203_v52 = vadd.f32 %v2436_v23, %v1202_v46 }
 0x222   :  { %v1226_v60 = vmax.f32 %v1203_v52, 0.0  ;;  %v1358_v31 = vpop.f32.mrf.mxu3  ;;  %v1357_v52 = vadd.f32 %v2490_v37, %v1356_v11 }
 0x224   :  { %v1236_v14 = vpack.c.bf16 %v1226_v60, %v1225_v3 }
 0x226   :  { %1531 = vmatmul.msk.bf16.gmra.mxu2 %vm963_vm13, %v1236_v14 }
 0x227   :  { %v1205_v21 = vpop.f32.mrf.mxu1 }
 0x228   :  { %v1206_v16 = vadd.f32 %v2436_v23, %v1205_v21 }
 0x22a   :  { %v1227_v54 = vmax.f32 %v1206_v16, 0.0  ;;  %v1361_v16 = vpop.f32.mrf.mxu3 }
 0x22f   :  { %v1207_v50 = vpop.f32.mrf.mxu1 }
 0x230   :  { %v1208_v0 = vadd.f32 %v2436_v23, %v1207_v50 }
 0x232   :  { %v1228_v10 = vmax.f32 %v1208_v0, 0.0 }
 0x234   :  { %v1237_v15 = vpack.c.bf16 %v1228_v10, %v1227_v54  ;;  %v1359_v54 = vadd.f32 %v2490_v37, %v1358_v31 }
 0x236   :  { %1532 = vmatmul.msk.bf16.gmra.mxu2 %vm963_vm13, %v1237_v15 }
 0x237   :  { %v1210_v18 = vpop.f32.mrf.mxu1 }
 0x238   :  { %v1211_v45 = vadd.f32 %v2436_v23, %v1210_v18 }
 0x23a   :  { %v1229_v63 = vmax.f32 %v1211_v45, 0.0  ;;  %v1363_v45 = vpop.f32.mrf.mxu3 }
 0x23f   :  { %v1212_v35 = vpop.f32.mrf.mxu1 }
 0x240   :  { %v1213_v47 = vadd.f32 %v2436_v23, %v1212_v35  ;;  %v1362_v35 = vadd.f32 %v2490_v37, %v1361_v16 }
 0x242   :  { %v1230_v38 = vmax.f32 %v1213_v47, 0.0 }
 0x244   :  { %v1238_v25 = vpack.c.bf16 %v1230_v38, %v1229_v63  ;;  %v1280_v58 = vpop.f32.mrf.mxu2 }
 0x245   :  { %v1281_v29 = vadd.f32 %v2496_v28, %v1280_v58 }
 0x246   :  { %1533 = vmatmul.msk.bf16.gmra.mxu2 %vm963_vm13, %v1238_v25 }
 0x247   :  { %v1381_v8 = vadd.f32 %v1342_v51, %v1281_v29  ;;  %v1366_v51 = vpop.f32.mrf.mxu3 }
 0x249   :  { %v1397_v6 = vmax.f32 %v1381_v8, 0.0  ;;  %v1364_v8 = vadd.f32 %v2490_v37, %v1363_v45 }
 0x24b   :  { %v1413_v23 = vpack.c.bf16 %v1397_v6, %v1397_v6 }
 0x24c   :  { %v1282_v30 = vpop.f32.mrf.mxu2 }
 0x24d   :  { %1430 = vst.msk [vmem:[%s2605_s10] sm:$0xf] %vm1429_vm0, %v1413_v23  ;;  %v1283_v40 = vadd.f32 %v2496_v28, %v1282_v30 }
 0x24f   :  { %v1382_v33 = vadd.f32 %v1344_v1, %v1283_v40  ;;  %v1368_v1 = vpop.f32.mrf.mxu3  ;;  %v1367_v40 = vadd.f32 %v2490_v37, %v1366_v51 }
 0x251   :  { %v1398_v56 = vmax.f32 %v1382_v33, 0.0 }
 0x253   :  { %v1414_v55 = vpack.c.bf16 %v1398_v56, %v1398_v56 }
 0x255   :  { %1431 = vst.msk [vmem:[%s2605_s10 + $0x4] sm:$0xf] %vm1429_vm0, %v1414_v55 }
 0x257   :  { %v1371_v13 = vpop.f32.mrf.mxu3 }
 0x259   :  { %v1285_v26 = vpop.f32.mrf.mxu2 }
 0x25a   :  { %v1286_v5 = vadd.f32 %v2496_v28, %v1285_v26 }
 0x25c   :  { %v1383_v61 = vadd.f32 %v1347_v48, %v1286_v5  ;;  %v1369_v5 = vadd.f32 %v2490_v37, %v1368_v1 }
 0x25e   :  { %v1399_v42 = vmax.f32 %v1383_v61, 0.0 }
 0x260   :  { %v1415_v59 = vpack.c.bf16 %v1399_v42, %v1399_v42 }
 0x261   :  { %v1287_v22 = vpop.f32.mrf.mxu2 }
 0x262   :  { %1432 = vst.msk [vmem:[%s2605_s10 + $0x8] sm:$0xf] %vm1429_vm0, %v1415_v59  ;;  %v1288_v4 = vadd.f32 %v2496_v28, %v1287_v22  ;;  %v1372_v22 = vadd.f32 %v2490_v37, %v1371_v13 }
 0x264   :  { %v1384_v7 = vadd.f32 %v1349_v2, %v1288_v4 }
 0x266   :  { %v1400_v39 = vmax.f32 %v1384_v7, 0.0  ;;  %v1373_v7 = vpop.f32.mrf.mxu3 }
 0x268   :  { %v1416_v20 = vpack.c.bf16 %v1400_v39, %v1400_v39 }
 0x26a   :  { %1433 = vst.msk [vmem:[%s2605_s10 + $0xc] sm:$0xf] %vm1429_vm0, %v1416_v20 }
 0x273   :  { %v1290_v49 = vpop.f32.mrf.mxu2 }
 0x274   :  { %v1291_v43 = vadd.f32 %v2496_v28, %v1290_v49  ;;  %v1374_v49 = vadd.f32 %v2490_v37, %v1373_v7 }
 0x276   :  { %v1385_v41 = vadd.f32 %v1352_v19, %v1291_v43 }
 0x278   :  { %v1401_v24 = vmax.f32 %v1385_v41, 0.0  ;;  %v1376_v41 = vpop.f32.mrf.mxu3 }
 0x27a   :  { %v1417_v17 = vpack.c.bf16 %v1401_v24, %v1401_v24 }
 0x27b   :  { %v1292_v34 = vpop.f32.mrf.mxu2 }
 0x27c   :  { %1434 = vst.msk [vmem:[%s2605_s10 + $0x10] sm:$0xf] %vm1429_vm0, %v1417_v17  ;;  %v1293_v36 = vadd.f32 %v2496_v28, %v1292_v34  ;;  %v1377_v34 = vadd.f32 %v2490_v37, %v1376_v41 }
 0x27e   :  { %v1386_v32 = vadd.f32 %v1354_v9, %v1293_v36 }
 0x280   :  { %v1402_v12 = vmax.f32 %v1386_v32, 0.0 }
 0x282   :  { %v1418_v46 = vpack.c.bf16 %v1402_v12, %v1402_v12  ;;  %v1378_v12 = vpop.f32.mrf.mxu3 }
 0x283   :  { %v1295_v3 = vpop.f32.mrf.mxu2 }
 0x284   :  { %1435 = vst.msk [vmem:[%s2605_s10 + $0x14] sm:$0xf] %vm1429_vm0, %v1418_v46  ;;  %v1296_v60 = vadd.f32 %v2496_v28, %v1295_v3  ;;  %v1379_v3 = vadd.f32 %v2490_v37, %v1378_v12 }
 0x286   :  { %v1387_v14 = vadd.f32 %v1357_v52, %v1296_v60 }
 0x288   :  { %v1403_v21 = vmax.f32 %v1387_v14, 0.0 }
 0x28a   :  { %v1419_v50 = vpack.c.bf16 %v1403_v21, %v1403_v21 }
 0x28b   :  { %v1297_v0 = vpop.f32.mrf.mxu2 }
 0x28c   :  { %1436 = vst.msk [vmem:[%s2605_s10 + $0x18] sm:$0xf] %vm1429_vm0, %v1419_v50  ;;  %v1298_v10 = vadd.f32 %v2496_v28, %v1297_v0 }
 0x28e   :  { %v1388_v15 = vadd.f32 %v1359_v54, %v1298_v10 }
 0x290   :  { %v1404_v18 = vmax.f32 %v1388_v15, 0.0 }
 0x292   :  { %v1420_v44 = vpack.c.bf16 %v1404_v18, %v1404_v18 }
 0x294   :  { %1437 = vst.msk [vmem:[%s2605_s10 + $0x1c] sm:$0xf] %vm1429_vm0, %v1420_v44 }
 0x299   :  { %v1300_v47 = vpop.f32.mrf.mxu2 }
 0x29a   :  { %v1301_v63 = vadd.f32 %v2496_v28, %v1300_v47 }
 0x29c   :  { %v1389_v38 = vadd.f32 %v1362_v35, %v1301_v63 }
 0x29e   :  { %v1405_v25 = vmax.f32 %v1389_v38, 0.0 }
 0x2a0   :  { %v1421_v58 = vpack.c.bf16 %v1405_v25, %v1405_v25 }
 0x2a1   :  { %v1302_v29 = vpop.f32.mrf.mxu2 }
 0x2a2   :  { %1438 = vst.msk [vmem:[%s2605_s10 + $0x20] sm:$0xf] %vm1429_vm0, %v1421_v58  ;;  %v1303_v53 = vadd.f32 %v2496_v28, %v1302_v29 }
 0x2a4   :  { %v1390_v6 = vadd.f32 %v1364_v8, %v1303_v53 }
 0x2a6   :  { %v1406_v23 = vmax.f32 %v1390_v6, 0.0 }
 0x2a8   :  { %v1422_v30 = vpack.c.bf16 %v1406_v23, %v1406_v23 }
 0x2a9   :  { %v1305_v33 = vpop.f32.mrf.mxu2 }
 0x2aa   :  { %1439 = vst.msk [vmem:[%s2605_s10 + $0x24] sm:$0xf] %vm1429_vm0, %v1422_v30  ;;  %v1306_v62 = vadd.f32 %v2496_v28, %v1305_v33 }
 0x2ac   :  { %v1391_v56 = vadd.f32 %v1367_v40, %v1306_v62 }
 0x2ae   :  { %v1407_v55 = vmax.f32 %v1391_v56, 0.0 }
 0x2b0   :  { %v1423_v48 = vpack.c.bf16 %v1407_v55, %v1407_v55 }
 0x2b1   :  { %v1307_v26 = vpop.f32.mrf.mxu2 }
 0x2b2   :  { %1440 = vst.msk [vmem:[%s2605_s10 + $0x28] sm:$0xf] %vm1429_vm0, %v1423_v48  ;;  %v1308_v61 = vadd.f32 %v2496_v28, %v1307_v26 }
 0x2b4   :  { %v1392_v42 = vadd.f32 %v1369_v5, %v1308_v61 }
 0x2b6   :  { %v1408_v59 = vmax.f32 %v1392_v42, 0.0 }
 0x2b8   :  { %v1424_v2 = vpack.c.bf16 %v1408_v59, %v1408_v59 }
 0x2b9   :  { %v1310_v27 = vpop.f32.mrf.mxu2 }
 0x2ba   :  { %1441 = vst.msk [vmem:[%s2605_s10 + $0x2c] sm:$0xf] %vm1429_vm0, %v1424_v2  ;;  %v1311_v4 = vadd.f32 %v2496_v28, %v1310_v27 }
 0x2bc   :  { %v1393_v39 = vadd.f32 %v1372_v22, %v1311_v4 }
 0x2be   :  { %v1409_v20 = vmax.f32 %v1393_v39, 0.0 }
 0x2c0   :  { %v1425_v57 = vpack.c.bf16 %v1409_v20, %v1409_v20 }
 0x2c1   :  { %v1312_v19 = vpop.f32.mrf.mxu2 }
 0x2c2   :  { %1442 = vst.msk [vmem:[%s2605_s10 + $0x30] sm:$0xf] %vm1429_vm0, %v1425_v57  ;;  %v1313_v43 = vadd.f32 %v2496_v28, %v1312_v19 }
 0x2c4   :  { %v1394_v11 = vadd.f32 %v1374_v49, %v1313_v43 }
 0x2c6   :  { %v1410_v24 = vmax.f32 %v1394_v11, 0.0 }
 0x2c8   :  { %v1426_v17 = vpack.c.bf16 %v1410_v24, %v1410_v24 }
 0x2c9   :  { %v1315_v9 = vpop.f32.mrf.mxu2 }
 0x2ca   :  { %1443 = vst.msk [vmem:[%s2605_s10 + $0x34] sm:$0xf] %vm1429_vm0, %v1426_v17  ;;  %v1316_v36 = vadd.f32 %v2496_v28, %v1315_v9 }
 0x2cc   :  { %v1395_v32 = vadd.f32 %v1377_v34, %v1316_v36 }
 0x2ce   :  { %v1411_v31 = vmax.f32 %v1395_v32, 0.0 }
 0x2d0   :  { %v1427_v46 = vpack.c.bf16 %v1411_v31, %v1411_v31 }
 0x2d1   :  { %v1317_v52 = vpop.f32.mrf.mxu2 }
 0x2d2   :  { %1444 = vst.msk [vmem:[%s2605_s10 + $0x38] sm:$0xf] %vm1429_vm0, %v1427_v46  ;;  %v1318_v60 = vadd.f32 %v2496_v28, %v1317_v52 }
 0x2d4   :  { %v1396_v14 = vadd.f32 %v1379_v3, %v1318_v60 }
 0x2d6   :  { %v1412_v21 = vmax.f32 %v1396_v14, 0.0 }
 0x2d8   :  { %v1428_v16 = vpack.c.bf16 %v1412_v21, %v1412_v21 }
 0x2da   :  { %1445 = vst.msk [vmem:[%s2605_s10 + $0x3c] sm:$0xf] %vm1429_vm0, %v1428_v16 }

</bundles_post_ra>
